<compile_context>
chip_gen: v7x
topology: tpu7x:2x2x1
jax: 0.10.0
libtpu: 0.0.40
codegen_flags: <defaults>
</compile_context>

<pallas_src>
import jax
import jax.numpy as jnp
from jax import lax
from jax.experimental import pallas as pl
from jax.experimental.pallas import tpu as pltpu

# ---------------- small config (consistent with the module's forward) ----------------
B = 2            # batch
T = 256          # waveform samples
K0 = 16          # wav2mel kernel_size (orig 1024)
S0 = 8           # wav2mel stride      (orig 488)
PAD = K0 // 2    # wav2mel padding
M = 8            # wav2mel out_channels == td_layer1 in_channels (orig 128)
H = 16           # hidden_size / channels (orig 512)

L0 = (T + 2 * PAD - K0) // S0 + 1   # bn1 normalized dim (orig 302)
L1 = L0 - (5 - 1) * 1               # bn2 (orig 298)
L2 = L1 - (3 - 1) * 2               # bn3 (orig 294)
L3 = L2 - (3 - 1) * 3               # bn4 (orig 288)

BH = B * H
KW1 = 5 * M          # packed td_layer1 contraction width
OUT_L = 128          # lane-dense output width (>= L3, multiple of 128)
EPS = 1e-5


def _leaky(x):
    return jnp.where(x >= 0, x, 0.2 * x)


def _layernorm_1pass(x, g, b):
    # Single reduction pass: var = E[x^2] - E[x]^2 (biased), eps=1e-5 (PyTorch semantics).
    inv_n = 1.0 / x.shape[-1]
    s = jnp.sum(x, axis=-1, keepdims=True)
    ss = jnp.sum(x * x, axis=-1, keepdims=True)
    mean = s * inv_n
    var = ss * inv_n - mean * mean
    return (x - mean) * lax.rsqrt(var + EPS) * g + b


# ---------------------------------- Pallas kernel ----------------------------------
# Inputs (all whole-array VMEM blocks, no grid):
#   frames_ref : (K0, B*L0)   bf16  framed waveform, batch packed on lanes
#   w0_ref     : (M, K0)      bf16  wav2mel weight
#   w1_ref     : (H, 5*M)     bf16  td_layer1 weight packed for fused im2col matmul
#   ln_ref     : (8, L0)      f32   rows: g1,b1,g2,b2,g3,b3,g4,b4 (zero-padded to L0)
#   misc_ref   : (B*H, 13)    f32   cols: c1,c2,c3,c4,c5, w2[0..2], w3[0..2], w4, w5
#                                    (tiled over batch so it broadcasts against (B*H, L))
#   out_ref    : (B*H, 128)   f32   lane-dense output slab (first L3 lanes valid)
def tdnn_kernel(frames_ref, w0_ref, w1_ref, ln_ref, misc_ref, out_ref):
    w0 = w0_ref[...]
    w1 = w1_ref[...]

    # ---- Stage 1: wav2mel for both batch elements in ONE MXU pass (batch on lanes) ----
    mel = jnp.dot(w0, frames_ref[...], preferred_element_type=jnp.float32)   # (M, B*L0)

    # ---- bn1 + LeakyReLU + fused 5-tap im2col, per batch segment (B=2 static unroll) ----
    g1 = ln_ref[0:1, :L0]
    be1 = ln_ref[1:2, :L0]
    xcols = []
    for bi in range(B):
        xb = _leaky(_layernorm_1pass(mel[:, bi * L0:(bi + 1) * L0], g1, be1))   # (M, L0)
        xcols.append(jnp.concatenate([xb[:, k:k + L1] for k in range(5)], axis=0))  # (5M, L1)
    xcol = jnp.concatenate(xcols, axis=1).astype(jnp.bfloat16)                  # (5M, B*L1)

    # ---- Stage 2: td_layer1 for both batch elements in ONE MXU pass ----
    y = jnp.dot(w1, xcol, preferred_element_type=jnp.float32)                   # (H, B*L1)
    # move batch to the sublane axis for the depthwise stages
    x = jnp.concatenate([y[:, bi * L1:(bi + 1) * L1] for bi in range(B)], axis=0)  # (B*H, L1)
    x = x + misc_ref[:, 0:1]                                                    # + c1
    x = _leaky(_layernorm_1pass(x, ln_ref[2:3, :L1], ln_ref[3:4, :L1]))          # bn2

    # ---- Stage 3: td_layer2 depthwise k=3, d=2 + bn3 + LeakyReLU ----
    acc = misc_ref[:, 5:6] * x[:, 0:L2] + misc_ref[:, 1:2]                      # k=0 tap + c2
    acc = acc + misc_ref[:, 6:7] * x[:, 2:2 + L2]
    acc = acc + misc_ref[:, 7:8] * x[:, 4:4 + L2]
    x = _leaky(_layernorm_1pass(acc, ln_ref[4:5, :L2], ln_ref[5:6, :L2]))

    # ---- Stage 4: td_layer3 depthwise k=3, d=3 + bn4 + LeakyReLU ----
    acc = misc_ref[:, 8:9] * x[:, 0:L3] + misc_ref[:, 2:3]                      # k=0 tap + c3
    acc = acc + misc_ref[:, 9:10] * x[:, 3:3 + L3]
    acc = acc + misc_ref[:, 10:11] * x[:, 6:6 + L3]
    x = _leaky(_layernorm_1pass(acc, ln_ref[6:7, :L3], ln_ref[7:8, :L3]))

    # ---- Stage 5: td_layer4 depthwise k=1 + bn4 (reused, as in the module) ----
    x = _leaky(_layernorm_1pass(misc_ref[:, 11:12] * x + misc_ref[:, 3:4],
                                ln_ref[6:7, :L3], ln_ref[7:8, :L3]))

    # ---- Stage 6: td_layer5 depthwise k=1, no norm; lane-dense padded store ----
    res = misc_ref[:, 12:13] * x + misc_ref[:, 4:5]                             # (B*H, L3)
    pad = jnp.zeros((BH, OUT_L - L3), jnp.float32)
    out_ref[...] = jnp.concatenate([res, pad], axis=-1)                         # full 128-lane store


# ------------------------------------ wrapper ---------------------------------------
def tdnn_forward(waveform, params):
    (w0, g1, b1, w1, c1, g2, b2, w2, c2,
     g3, b3, w3, c3, g4, b4, w4, c4, w5, c5) = params

    # glue: frame the waveform (im2col for the strided wav2mel conv), batch packed on lanes
    # TODO(synk): at the original scale (K0=1024, S0=488) frame in-kernel from the padded
    # waveform via strided reads instead of materializing the im2col in HBM.
    xp = jnp.pad(waveform[:, 0, :], ((0, 0), (PAD, PAD)))
    idx = jnp.arange(L0)[:, None] * S0 + jnp.arange(K0)[None, :]         # (L0, K0)
    frames = jnp.transpose(xp[:, idx], (2, 0, 1)).reshape(K0, B * L0)    # (K0, B*L0)
    frames = frames.astype(jnp.bfloat16)

    # pack matmul weights (bf16 inputs, f32 accumulation in-kernel)
    w0b = w0.reshape(M, K0).astype(jnp.bfloat16)                          # (M, K0)
    w1b = jnp.transpose(w1, (0, 2, 1)).reshape(H, KW1).astype(jnp.bfloat16)  # (H, 5*M)

    # pack LayerNorm params: rows g1,b1,g2,b2,g3,b3,g4,b4, zero-padded to L0 lanes
    def _padL(v):
        return jnp.pad(v, (0, L0 - v.shape[0]))
    lnp = jnp.stack([_padL(g1), _padL(b1), _padL(g2), _padL(b2),
                     _padL(g3), _padL(b3), _padL(g4), _padL(b4)], axis=0)   # (8, L0)

    # pack per-channel biases + depthwise weights, tiled over batch for sublane stacking
    cols = jnp.stack([c1, c2, c3, c4, c5,
                      w2[:, 0, 0], w2[:, 0, 1], w2[:, 0, 2],
                      w3[:, 0, 0], w3[:, 0, 1], w3[:, 0, 2],
                      w4[:, 0, 0], w5[:, 0, 0]], axis=1)                  # (H, 13)
    misc = jnp.tile(cols, (B, 1))                                         # (B*H, 13)

    vmem = pl.BlockSpec(memory_space=pltpu.MemorySpace.VMEM)
    out = pl.pallas_call(
        tdnn_kernel,
        out_shape=jax.ShapeDtypeStruct((BH, OUT_L), jnp.float32),
        in_specs=[vmem, vmem, vmem, vmem, vmem],
        out_specs=vmem,
    )(frames, w0b, w1b, lnp, misc)

    return out.reshape(B, H, OUT_L)[:, :, :L3]


# ------------------------------- pure-JAX reference --------------------------------
def _layernorm_ref(x, g, b):
    mean = jnp.mean(x, axis=-1, keepdims=True)
    var = jnp.mean((x - mean) ** 2, axis=-1, keepdims=True)
    return (x - mean) * lax.rsqrt(var + EPS) * g + b


def tdnn_reference(waveform, params):
    (w0, g1, b1, w1, c1, g2, b2, w2, c2,
     g3, b3, w3, c3, g4, b4, w4, c4, w5, c5) = params
    bf = jnp.bfloat16

    xp = jnp.pad(waveform[:, 0, :], ((0, 0), (PAD, PAD)))
    idx = jnp.arange(L0)[:, None] * S0 + jnp.arange(K0)[None, :]
    frames = xp[:, idx]                                            # (B, L0, K0)
    mel = jnp.einsum('blk,mk->bml', frames.astype(bf), w0.reshape(M, K0).astype(bf),
                     preferred_element_type=jnp.float32)
    x = _leaky(_layernorm_ref(mel, g1, b1))

    y = jnp.zeros((B, H, L1), jnp.float32)
    for k in range(5):
        y = y + jnp.einsum('hm,bml->bhl', w1[:, :, k].astype(bf),
                           x[:, :, k:k + L1].astype(bf),
                           preferred_element_type=jnp.float32)
    x = _leaky(_layernorm_ref(y + c1[None, :, None], g2, b2))

    y = jnp.zeros((B, H, L2), jnp.float32)
    for k in range(3):
        y = y + w2[None, :, 0, k, None] * x[:, :, 2 * k:2 * k + L2]
    x = _leaky(_layernorm_ref(y + c2[None, :, None], g3, b3))

    y = jnp.zeros((B, H, L3), jnp.float32)
    for k in range(3):
        y = y + w3[None, :, 0, k, None] * x[:, :, 3 * k:3 * k + L3]
    x = _leaky(_layernorm_ref(y + c3[None, :, None], g4, b4))

    x = _leaky(_layernorm_ref(w4[None, :, 0, 0, None] * x + c4[None, :, None], g4, b4))
    return w5[None, :, 0, 0, None] * x + c5[None, :, None]


# ----------------------------------- param init ------------------------------------
def init_params(key):
    ks = jax.random.split(key, 12)
    w0 = jax.random.normal(ks[0], (M, 1, K0), jnp.float32) * 0.1     # wav2mel (bias=False)
    w1 = jax.random.normal(ks[1], (H, M, 5), jnp.float32) * 0.1      # td_layer1
    c1 = jax.random.normal(ks[2], (H,), jnp.float32) * 0.05
    w2 = jax.random.normal(ks[3], (H, 1, 3), jnp.float32) * 0.1      # td_layer2 (depthwise)
    c2 = jax.random.normal(ks[4], (H,), jnp.float32) * 0.05
    w3 = jax.random.normal(ks[5], (H, 1, 3), jnp.float32) * 0.1      # td_layer3 (depthwise)
    c3 = jax.random.normal(ks[6], (H,), jnp.float32) * 0.05
    w4 = jax.random.normal(ks[7], (H, 1, 1), jnp.float32) * 0.1      # td_layer4 (depthwise)
    c4 = jax.random.normal(ks[8], (H,), jnp.float32) * 0.05
    w5 = jax.random.normal(ks[9], (H, 1, 1), jnp.float32) * 0.1      # td_layer5 (depthwise)
    c5 = jax.random.normal(ks[10], (H,), jnp.float32) * 0.05

    def ln_pair(i, n):
        g = 1.0 + 0.01 * jax.random.normal(jax.random.fold_in(ks[11], 2 * i), (n,), jnp.float32)
        b = 0.01 * jax.random.normal(jax.random.fold_in(ks[11], 2 * i + 1), (n,), jnp.float32)
        return g, b

    g1, b1 = ln_pair(0, L0)
    g2, b2 = ln_pair(1, L1)
    g3, b3 = ln_pair(2, L2)
    g4, b4 = ln_pair(3, L3)
    return (w0, g1, b1, w1, c1, g2, b2, w2, c2, g3, b3, w3, c3, g4, b4, w4, c4, w5, c5)


if __name__ == "__main__":
    key = jax.random.PRNGKey(0)
    kx, kp = jax.random.split(key)
    waveform = jax.random.normal(kx, (B, 1, T), jnp.float32)   # (batch, 1, samples), NCL
    params = init_params(kp)

    out = jax.jit(tdnn_forward)(waveform, params)
    out = jax.block_until_ready(out)

    ref = tdnn_reference(waveform, params)
    assert out.shape == (B, H, L3), out.shape
    err = float(jnp.max(jnp.abs(out - ref)))
    # bf16-MXU matmuls + single-pass LayerNorm vs. the two-pass f32 reference path
    assert jnp.allclose(out, ref, atol=2e-3, rtol=2e-3), f"max abs err {err}"
    print("KERNEL_OK")
</pallas_src>

<mosaic_0001>
module attributes {stable_mosaic.version = 11 : i64} {
  func.func @tdnn_kernel(%arg0: memref<16x66xbf16, #tpu.memory_space<vmem>>, %arg1: memref<8x16xbf16, #tpu.memory_space<vmem>>, %arg2: memref<16x40xbf16, #tpu.memory_space<vmem>>, %arg3: memref<8x33xf32, #tpu.memory_space<vmem>>, %arg4: memref<32x13xf32, #tpu.memory_space<vmem>>, %arg5: memref<32x128xf32, #tpu.memory_space<vmem>>) attributes {dimension_semantics = [], scalar_prefetch = 0 : i64, scratch_operands = 0 : i64, tpu.core_type = #tpu.core_type<tc>} {
    %c0 = arith.constant 0 : index
    %c0_0 = arith.constant 0 : index
    %0 = vector.load %arg1[%c0, %c0_0] : memref<8x16xbf16, #tpu.memory_space<vmem>>, vector<8x16xbf16>
    %c0_1 = arith.constant 0 : index
    %c0_2 = arith.constant 0 : index
    %1 = vector.load %arg2[%c0_1, %c0_2] : memref<16x40xbf16, #tpu.memory_space<vmem>>, vector<16x40xbf16>
    %c0_3 = arith.constant 0 : index
    %c0_4 = arith.constant 0 : index
    %2 = vector.load %arg0[%c0_3, %c0_4] : memref<16x66xbf16, #tpu.memory_space<vmem>>, vector<16x66xbf16>
    %cst = arith.constant dense<0.000000e+00> : vector<8x66xf32>
    %3 = tpu.matmul %0, %2, %cst {dimension_numbers = #tpu.dot_dimension_numbers<[1], [0], [0], [1], [0, 0, 1, 1], [], []>} : vector<8x16xbf16>, vector<16x66xbf16>, vector<8x66xf32> -> vector<8x66xf32>
    %c0_5 = arith.constant 0 : index
    %c0_6 = arith.constant 0 : index
    %4 = vector.load %arg3[%c0_5, %c0_6] : memref<8x33xf32, #tpu.memory_space<vmem>>, vector<1x33xf32>
    %c1 = arith.constant 1 : index
    %c0_7 = arith.constant 0 : index
    %5 = vector.load %arg3[%c1, %c0_7] : memref<8x33xf32, #tpu.memory_space<vmem>>, vector<1x33xf32>
    %6 = vector.extract_strided_slice %3 {offsets = [0, 0], sizes = [8, 33], strides = [1, 1]} : vector<8x66xf32> to vector<8x33xf32>
    %cst_8 = arith.constant dense<0.000000e+00> : vector<8xf32>
    %7 = vector.multi_reduction <add>, %6, %cst_8 [1] : vector<8x33xf32> to vector<8xf32>
    %8 = vector.shape_cast %7 : vector<8xf32> to vector<8x1xf32>
    %9 = arith.mulf %6, %6 : vector<8x33xf32>
    %cst_9 = arith.constant dense<0.000000e+00> : vector<8xf32>
    %10 = vector.multi_reduction <add>, %9, %cst_9 [1] : vector<8x33xf32> to vector<8xf32>
    %11 = vector.shape_cast %10 : vector<8xf32> to vector<8x1xf32>
    %cst_10 = arith.constant 0.0303030312 : f32
    %12 = vector.broadcast %cst_10 : f32 to vector<8x1xf32>
    %13 = arith.mulf %8, %12 : vector<8x1xf32>
    %cst_11 = arith.constant 0.0303030312 : f32
    %14 = vector.broadcast %cst_11 : f32 to vector<8x1xf32>
    %15 = arith.mulf %11, %14 : vector<8x1xf32>
    %16 = arith.mulf %13, %13 : vector<8x1xf32>
    %17 = arith.subf %15, %16 : vector<8x1xf32>
    %18 = vector.broadcast %13 : vector<8x1xf32> to vector<8x33xf32>
    %19 = arith.subf %6, %18 : vector<8x33xf32>
    %cst_12 = arith.constant 9.99999974E-6 : f32
    %20 = vector.broadcast %cst_12 : f32 to vector<8x1xf32>
    %21 = arith.addf %17, %20 : vector<8x1xf32>
    %22 = math.rsqrt %21 : vector<8x1xf32>
    %23 = vector.broadcast %22 : vector<8x1xf32> to vector<8x33xf32>
    %24 = arith.mulf %19, %23 : vector<8x33xf32>
    %25 = vector.broadcast %4 : vector<1x33xf32> to vector<8x33xf32>
    %26 = arith.mulf %24, %25 : vector<8x33xf32>
    %27 = vector.broadcast %5 : vector<1x33xf32> to vector<8x33xf32>
    %28 = arith.addf %26, %27 : vector<8x33xf32>
    %cst_13 = arith.constant 0.000000e+00 : f32
    %29 = vector.broadcast %cst_13 : f32 to vector<8x33xf32>
    %30 = arith.cmpf oge, %28, %29 : vector<8x33xf32>
    %cst_14 = arith.constant 2.000000e-01 : f32
    %31 = vector.broadcast %cst_14 : f32 to vector<8x33xf32>
    %32 = arith.mulf %31, %28 : vector<8x33xf32>
    %33 = arith.select %30, %28, %32 : vector<8x33xi1>, vector<8x33xf32>
    %34 = vector.extract_strided_slice %33 {offsets = [0, 0], sizes = [8, 29], strides = [1, 1]} : vector<8x33xf32> to vector<8x29xf32>
    %35 = vector.extract_strided_slice %33 {offsets = [0, 1], sizes = [8, 29], strides = [1, 1]} : vector<8x33xf32> to vector<8x29xf32>
    %36 = vector.extract_strided_slice %33 {offsets = [0, 2], sizes = [8, 29], strides = [1, 1]} : vector<8x33xf32> to vector<8x29xf32>
    %37 = vector.extract_strided_slice %33 {offsets = [0, 3], sizes = [8, 29], strides = [1, 1]} : vector<8x33xf32> to vector<8x29xf32>
    %38 = vector.extract_strided_slice %33 {offsets = [0, 4], sizes = [8, 29], strides = [1, 1]} : vector<8x33xf32> to vector<8x29xf32>
    %39 = tpu.concatenate %34, %35, %36, %37, %38 in 0 : vector<8x29xf32>, vector<8x29xf32>, vector<8x29xf32>, vector<8x29xf32>, vector<8x29xf32> -> vector<40x29xf32>
    %40 = vector.extract_strided_slice %3 {offsets = [0, 33], sizes = [8, 33], strides = [1, 1]} : vector<8x66xf32> to vector<8x33xf32>
    %cst_15 = arith.constant dense<0.000000e+00> : vector<8xf32>
    %41 = vector.multi_reduction <add>, %40, %cst_15 [1] : vector<8x33xf32> to vector<8xf32>
    %42 = vector.shape_cast %41 : vector<8xf32> to vector<8x1xf32>
    %43 = arith.mulf %40, %40 : vector<8x33xf32>
    %cst_16 = arith.constant dense<0.000000e+00> : vector<8xf32>
    %44 = vector.multi_reduction <add>, %43, %cst_16 [1] : vector<8x33xf32> to vector<8xf32>
    %45 = vector.shape_cast %44 : vector<8xf32> to vector<8x1xf32>
    %cst_17 = arith.constant 0.0303030312 : f32
    %46 = vector.broadcast %cst_17 : f32 to vector<8x1xf32>
    %47 = arith.mulf %42, %46 : vector<8x1xf32>
    %cst_18 = arith.constant 0.0303030312 : f32
    %48 = vector.broadcast %cst_18 : f32 to vector<8x1xf32>
    %49 = arith.mulf %45, %48 : vector<8x1xf32>
    %50 = arith.mulf %47, %47 : vector<8x1xf32>
    %51 = arith.subf %49, %50 : vector<8x1xf32>
    %52 = vector.broadcast %47 : vector<8x1xf32> to vector<8x33xf32>
    %53 = arith.subf %40, %52 : vector<8x33xf32>
    %cst_19 = arith.constant 9.99999974E-6 : f32
    %54 = vector.broadcast %cst_19 : f32 to vector<8x1xf32>
    %55 = arith.addf %51, %54 : vector<8x1xf32>
    %56 = math.rsqrt %55 : vector<8x1xf32>
    %57 = vector.broadcast %56 : vector<8x1xf32> to vector<8x33xf32>
    %58 = arith.mulf %53, %57 : vector<8x33xf32>
    %59 = vector.broadcast %4 : vector<1x33xf32> to vector<8x33xf32>
    %60 = arith.mulf %58, %59 : vector<8x33xf32>
    %61 = vector.broadcast %5 : vector<1x33xf32> to vector<8x33xf32>
    %62 = arith.addf %60, %61 : vector<8x33xf32>
    %cst_20 = arith.constant 0.000000e+00 : f32
    %63 = vector.broadcast %cst_20 : f32 to vector<8x33xf32>
    %64 = arith.cmpf oge, %62, %63 : vector<8x33xf32>
    %cst_21 = arith.constant 2.000000e-01 : f32
    %65 = vector.broadcast %cst_21 : f32 to vector<8x33xf32>
    %66 = arith.mulf %65, %62 : vector<8x33xf32>
    %67 = arith.select %64, %62, %66 : vector<8x33xi1>, vector<8x33xf32>
    %68 = vector.extract_strided_slice %67 {offsets = [0, 0], sizes = [8, 29], strides = [1, 1]} : vector<8x33xf32> to vector<8x29xf32>
    %69 = vector.extract_strided_slice %67 {offsets = [0, 1], sizes = [8, 29], strides = [1, 1]} : vector<8x33xf32> to vector<8x29xf32>
    %70 = vector.extract_strided_slice %67 {offsets = [0, 2], sizes = [8, 29], strides = [1, 1]} : vector<8x33xf32> to vector<8x29xf32>
    %71 = vector.extract_strided_slice %67 {offsets = [0, 3], sizes = [8, 29], strides = [1, 1]} : vector<8x33xf32> to vector<8x29xf32>
    %72 = vector.extract_strided_slice %67 {offsets = [0, 4], sizes = [8, 29], strides = [1, 1]} : vector<8x33xf32> to vector<8x29xf32>
    %73 = tpu.concatenate %68, %69, %70, %71, %72 in 0 : vector<8x29xf32>, vector<8x29xf32>, vector<8x29xf32>, vector<8x29xf32>, vector<8x29xf32> -> vector<40x29xf32>
    %74 = tpu.concatenate %39, %73 in 1 : vector<40x29xf32>, vector<40x29xf32> -> vector<40x58xf32>
    %75 = arith.truncf %74 : vector<40x58xf32> to vector<40x58xbf16>
    %cst_22 = arith.constant dense<0.000000e+00> : vector<16x58xf32>
    %76 = tpu.matmul %1, %75, %cst_22 {dimension_numbers = #tpu.dot_dimension_numbers<[1], [0], [0], [1], [0, 0, 1, 1], [], []>} : vector<16x40xbf16>, vector<40x58xbf16>, vector<16x58xf32> -> vector<16x58xf32>
    %77 = vector.extract_strided_slice %76 {offsets = [0, 0], sizes = [16, 29], strides = [1, 1]} : vector<16x58xf32> to vector<16x29xf32>
    %78 = vector.extract_strided_slice %76 {offsets = [0, 29], sizes = [16, 29], strides = [1, 1]} : vector<16x58xf32> to vector<16x29xf32>
    %79 = tpu.concatenate %77, %78 in 0 : vector<16x29xf32>, vector<16x29xf32> -> vector<32x29xf32>
    %c0_23 = arith.constant 0 : index
    %c0_24 = arith.constant 0 : index
    %80 = vector.load %arg4[%c0_23, %c0_24] : memref<32x13xf32, #tpu.memory_space<vmem>>, vector<32x1xf32>
    %81 = vector.broadcast %80 : vector<32x1xf32> to vector<32x29xf32>
    %82 = arith.addf %79, %81 : vector<32x29xf32>
    %c2 = arith.constant 2 : index
    %c0_25 = arith.constant 0 : index
    %83 = vector.load %arg3[%c2, %c0_25] : memref<8x33xf32, #tpu.memory_space<vmem>>, vector<1x29xf32>
    %c3 = arith.constant 3 : index
    %c0_26 = arith.constant 0 : index
    %84 = vector.load %arg3[%c3, %c0_26] : memref<8x33xf32, #tpu.memory_space<vmem>>, vector<1x29xf32>
    %cst_27 = arith.constant dense<0.000000e+00> : vector<32xf32>
    %85 = vector.multi_reduction <add>, %82, %cst_27 [1] : vector<32x29xf32> to vector<32xf32>
    %86 = vector.shape_cast %85 : vector<32xf32> to vector<32x1xf32>
    %87 = arith.mulf %82, %82 : vector<32x29xf32>
    %cst_28 = arith.constant dense<0.000000e+00> : vector<32xf32>
    %88 = vector.multi_reduction <add>, %87, %cst_28 [1] : vector<32x29xf32> to vector<32xf32>
    %89 = vector.shape_cast %88 : vector<32xf32> to vector<32x1xf32>
    %cst_29 = arith.constant 0.0344827585 : f32
    %90 = vector.broadcast %cst_29 : f32 to vector<32x1xf32>
    %91 = arith.mulf %86, %90 : vector<32x1xf32>
    %cst_30 = arith.constant 0.0344827585 : f32
    %92 = vector.broadcast %cst_30 : f32 to vector<32x1xf32>
    %93 = arith.mulf %89, %92 : vector<32x1xf32>
    %94 = arith.mulf %91, %91 : vector<32x1xf32>
    %95 = arith.subf %93, %94 : vector<32x1xf32>
    %96 = vector.broadcast %91 : vector<32x1xf32> to vector<32x29xf32>
    %97 = arith.subf %82, %96 : vector<32x29xf32>
    %cst_31 = arith.constant 9.99999974E-6 : f32
    %98 = vector.broadcast %cst_31 : f32 to vector<32x1xf32>
    %99 = arith.addf %95, %98 : vector<32x1xf32>
    %100 = math.rsqrt %99 : vector<32x1xf32>
    %101 = vector.broadcast %100 : vector<32x1xf32> to vector<32x29xf32>
    %102 = arith.mulf %97, %101 : vector<32x29xf32>
    %103 = vector.broadcast %83 : vector<1x29xf32> to vector<32x29xf32>
    %104 = arith.mulf %102, %103 : vector<32x29xf32>
    %105 = vector.broadcast %84 : vector<1x29xf32> to vector<32x29xf32>
    %106 = arith.addf %104, %105 : vector<32x29xf32>
    %cst_32 = arith.constant 0.000000e+00 : f32
    %107 = vector.broadcast %cst_32 : f32 to vector<32x29xf32>
    %108 = arith.cmpf oge, %106, %107 : vector<32x29xf32>
    %cst_33 = arith.constant 2.000000e-01 : f32
    %109 = vector.broadcast %cst_33 : f32 to vector<32x29xf32>
    %110 = arith.mulf %109, %106 : vector<32x29xf32>
    %111 = arith.select %108, %106, %110 : vector<32x29xi1>, vector<32x29xf32>
    %c0_34 = arith.constant 0 : index
    %c5 = arith.constant 5 : index
    %112 = vector.load %arg4[%c0_34, %c5] : memref<32x13xf32, #tpu.memory_space<vmem>>, vector<32x1xf32>
    %113 = vector.extract_strided_slice %111 {offsets = [0, 0], sizes = [32, 25], strides = [1, 1]} : vector<32x29xf32> to vector<32x25xf32>
    %114 = vector.broadcast %112 : vector<32x1xf32> to vector<32x25xf32>
    %115 = arith.mulf %114, %113 : vector<32x25xf32>
    %c0_35 = arith.constant 0 : index
    %c1_36 = arith.constant 1 : index
    %116 = vector.load %arg4[%c0_35, %c1_36] : memref<32x13xf32, #tpu.memory_space<vmem>>, vector<32x1xf32>
    %117 = vector.broadcast %116 : vector<32x1xf32> to vector<32x25xf32>
    %118 = arith.addf %115, %117 : vector<32x25xf32>
    %c0_37 = arith.constant 0 : index
    %c6 = arith.constant 6 : index
    %119 = vector.load %arg4[%c0_37, %c6] : memref<32x13xf32, #tpu.memory_space<vmem>>, vector<32x1xf32>
    %120 = vector.extract_strided_slice %111 {offsets = [0, 2], sizes = [32, 25], strides = [1, 1]} : vector<32x29xf32> to vector<32x25xf32>
    %121 = vector.broadcast %119 : vector<32x1xf32> to vector<32x25xf32>
    %122 = arith.mulf %121, %120 : vector<32x25xf32>
    %123 = arith.addf %118, %122 : vector<32x25xf32>
    %c0_38 = arith.constant 0 : index
    %c7 = arith.constant 7 : index
    %124 = vector.load %arg4[%c0_38, %c7] : memref<32x13xf32, #tpu.memory_space<vmem>>, vector<32x1xf32>
    %125 = vector.extract_strided_slice %111 {offsets = [0, 4], sizes = [32, 25], strides = [1, 1]} : vector<32x29xf32> to vector<32x25xf32>
    %126 = vector.broadcast %124 : vector<32x1xf32> to vector<32x25xf32>
    %127 = arith.mulf %126, %125 : vector<32x25xf32>
    %128 = arith.addf %123, %127 : vector<32x25xf32>
    %c4 = arith.constant 4 : index
    %c0_39 = arith.constant 0 : index
    %129 = vector.load %arg3[%c4, %c0_39] : memref<8x33xf32, #tpu.memory_space<vmem>>, vector<1x25xf32>
    %c5_40 = arith.constant 5 : index
    %c0_41 = arith.constant 0 : index
    %130 = vector.load %arg3[%c5_40, %c0_41] : memref<8x33xf32, #tpu.memory_space<vmem>>, vector<1x25xf32>
    %cst_42 = arith.constant dense<0.000000e+00> : vector<32xf32>
    %131 = vector.multi_reduction <add>, %128, %cst_42 [1] : vector<32x25xf32> to vector<32xf32>
    %132 = vector.shape_cast %131 : vector<32xf32> to vector<32x1xf32>
    %133 = arith.mulf %128, %128 : vector<32x25xf32>
    %cst_43 = arith.constant dense<0.000000e+00> : vector<32xf32>
    %134 = vector.multi_reduction <add>, %133, %cst_43 [1] : vector<32x25xf32> to vector<32xf32>
    %135 = vector.shape_cast %134 : vector<32xf32> to vector<32x1xf32>
    %cst_44 = arith.constant 4.000000e-02 : f32
    %136 = vector.broadcast %cst_44 : f32 to vector<32x1xf32>
    %137 = arith.mulf %132, %136 : vector<32x1xf32>
    %cst_45 = arith.constant 4.000000e-02 : f32
    %138 = vector.broadcast %cst_45 : f32 to vector<32x1xf32>
    %139 = arith.mulf %135, %138 : vector<32x1xf32>
    %140 = arith.mulf %137, %137 : vector<32x1xf32>
    %141 = arith.subf %139, %140 : vector<32x1xf32>
    %142 = vector.broadcast %137 : vector<32x1xf32> to vector<32x25xf32>
    %143 = arith.subf %128, %142 : vector<32x25xf32>
    %cst_46 = arith.constant 9.99999974E-6 : f32
    %144 = vector.broadcast %cst_46 : f32 to vector<32x1xf32>
    %145 = arith.addf %141, %144 : vector<32x1xf32>
    %146 = math.rsqrt %145 : vector<32x1xf32>
    %147 = vector.broadcast %146 : vector<32x1xf32> to vector<32x25xf32>
    %148 = arith.mulf %143, %147 : vector<32x25xf32>
    %149 = vector.broadcast %129 : vector<1x25xf32> to vector<32x25xf32>
    %150 = arith.mulf %148, %149 : vector<32x25xf32>
    %151 = vector.broadcast %130 : vector<1x25xf32> to vector<32x25xf32>
    %152 = arith.addf %150, %151 : vector<32x25xf32>
    %cst_47 = arith.constant 0.000000e+00 : f32
    %153 = vector.broadcast %cst_47 : f32 to vector<32x25xf32>
    %154 = arith.cmpf oge, %152, %153 : vector<32x25xf32>
    %cst_48 = arith.constant 2.000000e-01 : f32
    %155 = vector.broadcast %cst_48 : f32 to vector<32x25xf32>
    %156 = arith.mulf %155, %152 : vector<32x25xf32>
    %157 = arith.select %154, %152, %156 : vector<32x25xi1>, vector<32x25xf32>
    %c0_49 = arith.constant 0 : index
    %c8 = arith.constant 8 : index
    %158 = vector.load %arg4[%c0_49, %c8] : memref<32x13xf32, #tpu.memory_space<vmem>>, vector<32x1xf32>
    %159 = vector.extract_strided_slice %157 {offsets = [0, 0], sizes = [32, 19], strides = [1, 1]} : vector<32x25xf32> to vector<32x19xf32>
    %160 = vector.broadcast %158 : vector<32x1xf32> to vector<32x19xf32>
    %161 = arith.mulf %160, %159 : vector<32x19xf32>
    %c0_50 = arith.constant 0 : index
    %c2_51 = arith.constant 2 : index
    %162 = vector.load %arg4[%c0_50, %c2_51] : memref<32x13xf32, #tpu.memory_space<vmem>>, vector<32x1xf32>
    %163 = vector.broadcast %162 : vector<32x1xf32> to vector<32x19xf32>
    %164 = arith.addf %161, %163 : vector<32x19xf32>
    %c0_52 = arith.constant 0 : index
    %c9 = arith.constant 9 : index
    %165 = vector.load %arg4[%c0_52, %c9] : memref<32x13xf32, #tpu.memory_space<vmem>>, vector<32x1xf32>
    %166 = vector.extract_strided_slice %157 {offsets = [0, 3], sizes = [32, 19], strides = [1, 1]} : vector<32x25xf32> to vector<32x19xf32>
    %167 = vector.broadcast %165 : vector<32x1xf32> to vector<32x19xf32>
    %168 = arith.mulf %167, %166 : vector<32x19xf32>
    %169 = arith.addf %164, %168 : vector<32x19xf32>
    %c0_53 = arith.constant 0 : index
    %c10 = arith.constant 10 : index
    %170 = vector.load %arg4[%c0_53, %c10] : memref<32x13xf32, #tpu.memory_space<vmem>>, vector<32x1xf32>
    %171 = vector.extract_strided_slice %157 {offsets = [0, 6], sizes = [32, 19], strides = [1, 1]} : vector<32x25xf32> to vector<32x19xf32>
    %172 = vector.broadcast %170 : vector<32x1xf32> to vector<32x19xf32>
    %173 = arith.mulf %172, %171 : vector<32x19xf32>
    %174 = arith.addf %169, %173 : vector<32x19xf32>
    %c6_54 = arith.constant 6 : index
    %c0_55 = arith.constant 0 : index
    %175 = vector.load %arg3[%c6_54, %c0_55] : memref<8x33xf32, #tpu.memory_space<vmem>>, vector<1x19xf32>
    %c7_56 = arith.constant 7 : index
    %c0_57 = arith.constant 0 : index
    %176 = vector.load %arg3[%c7_56, %c0_57] : memref<8x33xf32, #tpu.memory_space<vmem>>, vector<1x19xf32>
    %cst_58 = arith.constant dense<0.000000e+00> : vector<32xf32>
    %177 = vector.multi_reduction <add>, %174, %cst_58 [1] : vector<32x19xf32> to vector<32xf32>
    %178 = vector.shape_cast %177 : vector<32xf32> to vector<32x1xf32>
    %179 = arith.mulf %174, %174 : vector<32x19xf32>
    %cst_59 = arith.constant dense<0.000000e+00> : vector<32xf32>
    %180 = vector.multi_reduction <add>, %179, %cst_59 [1] : vector<32x19xf32> to vector<32xf32>
    %181 = vector.shape_cast %180 : vector<32xf32> to vector<32x1xf32>
    %cst_60 = arith.constant 0.0526315793 : f32
    %182 = vector.broadcast %cst_60 : f32 to vector<32x1xf32>
    %183 = arith.mulf %178, %182 : vector<32x1xf32>
    %cst_61 = arith.constant 0.0526315793 : f32
    %184 = vector.broadcast %cst_61 : f32 to vector<32x1xf32>
    %185 = arith.mulf %181, %184 : vector<32x1xf32>
    %186 = arith.mulf %183, %183 : vector<32x1xf32>
    %187 = arith.subf %185, %186 : vector<32x1xf32>
    %188 = vector.broadcast %183 : vector<32x1xf32> to vector<32x19xf32>
    %189 = arith.subf %174, %188 : vector<32x19xf32>
    %cst_62 = arith.constant 9.99999974E-6 : f32
    %190 = vector.broadcast %cst_62 : f32 to vector<32x1xf32>
    %191 = arith.addf %187, %190 : vector<32x1xf32>
    %192 = math.rsqrt %191 : vector<32x1xf32>
    %193 = vector.broadcast %192 : vector<32x1xf32> to vector<32x19xf32>
    %194 = arith.mulf %189, %193 : vector<32x19xf32>
    %195 = vector.broadcast %175 : vector<1x19xf32> to vector<32x19xf32>
    %196 = arith.mulf %194, %195 : vector<32x19xf32>
    %197 = vector.broadcast %176 : vector<1x19xf32> to vector<32x19xf32>
    %198 = arith.addf %196, %197 : vector<32x19xf32>
    %cst_63 = arith.constant 0.000000e+00 : f32
    %199 = vector.broadcast %cst_63 : f32 to vector<32x19xf32>
    %200 = arith.cmpf oge, %198, %199 : vector<32x19xf32>
    %cst_64 = arith.constant 2.000000e-01 : f32
    %201 = vector.broadcast %cst_64 : f32 to vector<32x19xf32>
    %202 = arith.mulf %201, %198 : vector<32x19xf32>
    %203 = arith.select %200, %198, %202 : vector<32x19xi1>, vector<32x19xf32>
    %c0_65 = arith.constant 0 : index
    %c11 = arith.constant 11 : index
    %204 = vector.load %arg4[%c0_65, %c11] : memref<32x13xf32, #tpu.memory_space<vmem>>, vector<32x1xf32>
    %205 = vector.broadcast %204 : vector<32x1xf32> to vector<32x19xf32>
    %206 = arith.mulf %205, %203 : vector<32x19xf32>
    %c0_66 = arith.constant 0 : index
    %c3_67 = arith.constant 3 : index
    %207 = vector.load %arg4[%c0_66, %c3_67] : memref<32x13xf32, #tpu.memory_space<vmem>>, vector<32x1xf32>
    %208 = vector.broadcast %207 : vector<32x1xf32> to vector<32x19xf32>
    %209 = arith.addf %206, %208 : vector<32x19xf32>
    %c6_68 = arith.constant 6 : index
    %c0_69 = arith.constant 0 : index
    %210 = vector.load %arg3[%c6_68, %c0_69] : memref<8x33xf32, #tpu.memory_space<vmem>>, vector<1x19xf32>
    %c7_70 = arith.constant 7 : index
    %c0_71 = arith.constant 0 : index
    %211 = vector.load %arg3[%c7_70, %c0_71] : memref<8x33xf32, #tpu.memory_space<vmem>>, vector<1x19xf32>
    %cst_72 = arith.constant dense<0.000000e+00> : vector<32xf32>
    %212 = vector.multi_reduction <add>, %209, %cst_72 [1] : vector<32x19xf32> to vector<32xf32>
    %213 = vector.shape_cast %212 : vector<32xf32> to vector<32x1xf32>
    %214 = arith.mulf %209, %209 : vector<32x19xf32>
    %cst_73 = arith.constant dense<0.000000e+00> : vector<32xf32>
    %215 = vector.multi_reduction <add>, %214, %cst_73 [1] : vector<32x19xf32> to vector<32xf32>
    %216 = vector.shape_cast %215 : vector<32xf32> to vector<32x1xf32>
    %cst_74 = arith.constant 0.0526315793 : f32
    %217 = vector.broadcast %cst_74 : f32 to vector<32x1xf32>
    %218 = arith.mulf %213, %217 : vector<32x1xf32>
    %cst_75 = arith.constant 0.0526315793 : f32
    %219 = vector.broadcast %cst_75 : f32 to vector<32x1xf32>
    %220 = arith.mulf %216, %219 : vector<32x1xf32>
    %221 = arith.mulf %218, %218 : vector<32x1xf32>
    %222 = arith.subf %220, %221 : vector<32x1xf32>
    %223 = vector.broadcast %218 : vector<32x1xf32> to vector<32x19xf32>
    %224 = arith.subf %209, %223 : vector<32x19xf32>
    %cst_76 = arith.constant 9.99999974E-6 : f32
    %225 = vector.broadcast %cst_76 : f32 to vector<32x1xf32>
    %226 = arith.addf %222, %225 : vector<32x1xf32>
    %227 = math.rsqrt %226 : vector<32x1xf32>
    %228 = vector.broadcast %227 : vector<32x1xf32> to vector<32x19xf32>
    %229 = arith.mulf %224, %228 : vector<32x19xf32>
    %230 = vector.broadcast %210 : vector<1x19xf32> to vector<32x19xf32>
    %231 = arith.mulf %229, %230 : vector<32x19xf32>
    %232 = vector.broadcast %211 : vector<1x19xf32> to vector<32x19xf32>
    %233 = arith.addf %231, %232 : vector<32x19xf32>
    %cst_77 = arith.constant 0.000000e+00 : f32
    %234 = vector.broadcast %cst_77 : f32 to vector<32x19xf32>
    %235 = arith.cmpf oge, %233, %234 : vector<32x19xf32>
    %cst_78 = arith.constant 2.000000e-01 : f32
    %236 = vector.broadcast %cst_78 : f32 to vector<32x19xf32>
    %237 = arith.mulf %236, %233 : vector<32x19xf32>
    %238 = arith.select %235, %233, %237 : vector<32x19xi1>, vector<32x19xf32>
    %c0_79 = arith.constant 0 : index
    %c12 = arith.constant 12 : index
    %239 = vector.load %arg4[%c0_79, %c12] : memref<32x13xf32, #tpu.memory_space<vmem>>, vector<32x1xf32>
    %240 = vector.broadcast %239 : vector<32x1xf32> to vector<32x19xf32>
    %241 = arith.mulf %240, %238 : vector<32x19xf32>
    %c0_80 = arith.constant 0 : index
    %c4_81 = arith.constant 4 : index
    %242 = vector.load %arg4[%c0_80, %c4_81] : memref<32x13xf32, #tpu.memory_space<vmem>>, vector<32x1xf32>
    %243 = vector.broadcast %242 : vector<32x1xf32> to vector<32x19xf32>
    %244 = arith.addf %241, %243 : vector<32x19xf32>
    %cst_82 = arith.constant 0.000000e+00 : f32
    %245 = vector.broadcast %cst_82 : f32 to vector<32x109xf32>
    %246 = tpu.concatenate %244, %245 in 1 : vector<32x19xf32>, vector<32x109xf32> -> vector<32x128xf32>
    %c0_83 = arith.constant 0 : index
    %c0_84 = arith.constant 0 : index
    %247 = vector.load %arg5[%c0_83, %c0_84] : memref<32x128xf32, #tpu.memory_space<vmem>>, vector<32x128xf32>
    tpu.vector_store %arg5[%c0_83, %c0_84], %246 {strides = array<i32>} : memref<32x128xf32, #tpu.memory_space<vmem>>, vector<32x128xf32>,
    return
  }
}

</mosaic_0001>

<bundles_post_ra>
// kernel: tdnn_forward.1
= control target key start
LH: loop header
LB: loop body
LE: loop exit
PB: predicated region body
PF: predicated region fallthrough
CT: control target
= control target key end

     0   :  { %v1132_v1 = vmov 0.0   ;;  %vm1133_vm0 = vmmov 0   ;;  %vm33_vm1 = vcmask 130048   ;;  %s1518_s0 = inlined_call_operand.vmem [shape: bf16[16,66], index: 0, kind: input, shape index: {}]   ;;  %s1519_s1 = inlined_call_operand.vmem [shape: bf16[8,16], index: 1, kind: input, shape index: {}]   ;;  %s1520_s2 = inlined_call_operand.vmem [shape: bf16[16,40], index: 2, kind: input, shape index: {}]   ;;  %s1521_s3 = inlined_call_operand.vmem [shape: f32[8,33], index: 3, kind: input, shape index: {}]   ;;  %s1522_s4 = inlined_call_operand.vmem [shape: f32[32,13], index: 4, kind: input, shape index: {}]   ;;  %s1523_s5 = inlined_call_operand.hbm [shape: f32[32,128], index: 5, kind: output, shape index: {}]  }
   0x1   :  { %v1066_v0 = vld [vmem:[%s1518_s0] sm:$0xff]   ;;  %991 = vmatprep.subr.bf16.mxu0 %v1132_v1  ;;  %997 = vmatprep.subr.bf16.mxu1 %v1132_v1 }
   0x2   :  { %v22_v2 = vld [vmem:[%s1519_s1] sm:$0xf]  ;;  %992 = vmatpush3.bf16.msra.mxu0 %v1066_v0  ;;  %993 = vmatprep.mubr.msk.bf16.mxu0 %vm1133_vm0, %v1132_v1 }
   0x3   :  { %10 = vsyncpa [#allocation3], 0  ;;  %1003 = vmatprep.mubr.msk.bf16.mxu1 %vm1133_vm0, %v1132_v1  ;;  %s1134_s0 = smov 95   ;;  %v975_v8 = vld [vmem:[%s1521_s3] ss:$0 sm:$0xff]  ;;  %s1135_s23 = smov 33  }
   0x4   :  { %vm79_vm2 = vcmask 269312   ;;  %v976_v14 = vld [vmem:[%s1521_s3 + $0x1] ss:$0 sm:$0xff]  ;;  %s1136_s26 = smov 126   ;;  %s1137_s27 = smov 127   ;;  %v1140_v51 = vmov 0  }
   0x5   :  { %994 = vmatmul.mubr.msk.bf16.vlgmr.msra.gmra.mrb[0].mxu0 %vm33_vm1, %v22_v2  ;;  %s1138_s28 = smov 125   ;;  %s1139_s29 = smov 124   ;;  %1043 = vset.pattern.permute.xlu1 %v1140_v51  ;;  %v1214_v52 = vld [vmem:[%s1522_s4] sm:$0xff]  ;;  %v1221_v54 = vld [vmem:[%s1522_s4 + $0x8] sm:$0xff]  ;;  %v1226_v55 = vld [vmem:[%s1522_s4 + $0x10] sm:$0xff]  ;;  %vm178_vm5 = vcmask 236544  }
   0x6   :  { %1044 = vset.pattern.permute.xlu0 %v1140_v51  ;;  %v1233_v56 = vld [vmem:[%s1522_s4 + $0x18] sm:$0xff]  ;;  %vm196_vm6 = vcmask 1043456   ;;  %vm192_vm7 = vcmask 326656   ;;  %s1142_s15 = smov 99   ;;  %vm489_vm12 = vcmask 203776   ;;  %s1150_s1 = smov 122  }
   0x7   :  { %vm700_vm1 = vcmask 154624  }
  0xd8   :  { %v71_v3 = vpop.f32.mrb[0].mxu0 }
  0xd9   :  { %122 = vrot.lane.b32.xlu0 %v71_v3, %s1134_s0  ;;  %v995_v4 = vpop.f32.mrb[1].mxu0  ;;  %v83_v7 = vmul.f32 %v71_v3, %v71_v3  ;;  %v80_v9 = vsel %vm79_vm2, %v71_v3, 0.0 }
  0xda   :  { %v74_v5 = vpop.f32.mrb[2].mxu0 }
  0xdb   :  { %v996_v6 = vpop.f32.mrb[3].mxu0  ;;  %v84_v15 = vsel %vm79_vm2, %v83_v7, 0.0 }
  0xdd   :  { %129 = vrot.lane.b32.xlu0 %v83_v7, %s1134_s0 }
  0xe1   :  { %144 = vrot.lane.b32.xlu0 %v975_v8, %s1135_s23 }
 0x100   :  { %81 = vadd.xlane.f32.xlu0 %v80_v9 }
 0x14b   :  { %v123_v10 = vpop.permute.xlu0 %122 }
 0x14c   :  { %v125_v11 = vsel %vm79_vm2, %v123_v10, 0.0 }
 0x14d   :  { %126 = vadd.xlane.f32.xlu1 %v125_v11 }
 0x14f   :  { %v130_v12 = vpop.permute.xlu0 %129 }
 0x150   :  { %v132_v13 = vsel %vm79_vm2, %v130_v12, 0.0 }
 0x151   :  { %133 = vadd.xlane.f32.xlu1 %v132_v13  ;;  %v1067_v13 = vld [vmem:[%s1520_s2] sm:$0xff]  }
 0x153   :  { %v145_v26 = vpop.permute.xlu0 %144 }
 0x162   :  { %149 = vrot.lane.b32.xlu1 %v976_v14, %s1135_s23 }
 0x186   :  { %85 = vadd.xlane.f32.xlu1 %v84_v15  ;;  %v1141_v15 = vmov 6  }
 0x18d   :  { %v82_v32 = vpop.xlane.xlu0 %81 }
 0x18e   :  { %v87_v33 = vmul.f32 0.030303031, %v82_v32 }
 0x190   :  { %v89_v35 = vmul.f32 %v87_v33, %v87_v33  ;;  %v91_v39 = vsub.f32 %v71_v3, %v87_v33 }
 0x1da   :  { %v127_v16 = vpop.xlane.xlu1 %126 }
 0x1db   :  { %v135_v17 = vmul.f32 0.030303031, %v127_v16 }
 0x1dd   :  { %v137_v19 = vmul.f32 %v135_v17, %v135_v17  ;;  %v139_v23 = vsub.f32 %v71_v3, %v135_v17 }
 0x1de   :  { %v134_v18 = vpop.xlane.xlu1 %133 }
 0x1df   :  { %v136_v20 = vmul.f32 0.030303031, %v134_v18 }
 0x1e1   :  { %v138_v21 = vsub.f32 %v136_v20, %v137_v19 }
 0x1e2   :  { %v150_v27 = vpop.permute.xlu1 %149 }
 0x1e3   :  { %v140_v22 = vadd.f32 1e-05, %v138_v21 }
 0x1e5   :  { %1068 = vrsqrt.f32 %v140_v22 }
 0x1ef   :  { %v1069_v24 = vpop.eup %1068 }
 0x1f0   :  { %v142_v25 = vmul.f32 %v1069_v24, %v139_v23 }
 0x1f2   :  { %v147_v28 = vmul.f32 %v145_v26, %v142_v25 }
 0x1f4   :  { %v152_v29 = vadd.f32 %v150_v27, %v147_v28 }
 0x1f6   :  { %v154_v30 = vmul.f32 0.2, %v152_v29  ;;  %vm153_vm3 = vcmp.ge.f32.partialorder %v152_v29, 0.0 }
 0x1f8   :  { %v155_v31 = vsel %vm153_vm3, %v152_v29, %v154_v30 }
 0x1f9   :  { %159 = vrot.lane.b32.xlu1 %v155_v31, %s1136_s26  ;;  %157 = vrot.lane.b32.xlu0 %v155_v31, %s1137_s27 }
 0x1fd   :  { %161 = vrot.lane.b32.xlu0 %v155_v31, %s1138_s28 }
 0x201   :  { %163 = vrot.lane.b32.xlu0 %v155_v31, %s1139_s29 }
 0x213   :  { %v86_v34 = vpop.xlane.xlu1 %85 }
 0x214   :  { %v88_v36 = vmul.f32 0.030303031, %v86_v34 }
 0x216   :  { %v90_v37 = vsub.f32 %v88_v36, %v89_v35 }
 0x218   :  { %v92_v38 = vadd.f32 1e-05, %v90_v37 }
 0x21a   :  { %1070 = vrsqrt.f32 %v92_v38 }
 0x224   :  { %v1071_v40 = vpop.eup %1070 }
 0x225   :  { %v94_v41 = vmul.f32 %v1071_v40, %v91_v39  ;;  %v1143_v40 = vmov 7  }
 0x227   :  { %v99_v42 = vmul.f32 %v975_v8, %v94_v41  ;;  %v1144_v41 = vmov 5  }
 0x229   :  { %v104_v43 = vadd.f32 %v976_v14, %v99_v42  ;;  %v1145_v42 = vmov 1  }
 0x22b   :  { %vm105_vm4 = vcmp.ge.f32.partialorder %v104_v43, 0.0  ;;  %v106_v44 = vmul.f32 0.2, %v104_v43 }
 0x22d   :  { %v107_v45 = vsel %vm105_vm4, %v104_v43, %v106_v44 }
 0x22e   :  { %112 = vrot.lane.b32.xlu1 %v107_v45, %s1136_s26  ;;  %109 = vrot.lane.b32.xlu0 %v107_v45, %s1137_s27 }
 0x26b   :  { %v160_v46 = vpop.permute.xlu1 %159  ;;  %v158_v47 = vpop.permute.xlu0 %157 }
 0x26c   :  { %v1033_v48 = vpack.i.bf16 %v160_v46, %v158_v47 }
 0x26e   :  { %1034 = vrot.lane.b32.xlu0 %v1033_v48, %s1139_s29 }
 0x26f   :  { %v162_v49 = vpop.permute.xlu0 %161 }
 0x270   :  { %v1038_v50 = vpack.i.bf16 %v107_v45, %v162_v49 }
 0x272   :  { %115 = vrot.lane.b32.xlu0 %v107_v45, %s1138_s28  ;;  %1039 = vrot.lane.b32.xlu1 %v1038_v50, %s1139_s29 }
 0x273   :  { %v164_v53 = vpop.permute.xlu0 %163 }
 0x274   :  { %v179_v61 = vsel %vm178_vm5, %v107_v45, %v164_v53 }
 0x276   :  { %171 = vrot.lane.b32.xlu0 %v164_v53, %s1139_s29  ;;  %255 = vperm.xlu1 %1043, %v1214_v52  }
 0x27a   :  { %260 = vperm.xlu0 %1044, %v1221_v54   ;;  %265 = vperm.xlu1 %1043, %v1226_v55  }
 0x27e   :  { %270 = vperm.xlu1 %1043, %v1233_v56   ;;  %1046 = vset.pattern.permute.xlu0 %v1141_v15 }
 0x282   :  { %1045 = vset.pattern.permute.xlu1 %v1141_v15 }
 0x2a0   :  { %v110_v57 = vpop.permute.xlu0 %109  ;;  %v113_v58 = vpop.permute.xlu1 %112 }
 0x2e0   :  { %v1035_v59 = vpop.permute.xlu0 %1034 }
 0x2e1   :  { %v1036_v60 = vunpack.i.l.bf16 %v1035_v59  ;;  %v1037_v62 = vunpack.i.h.bf16 %v1035_v59 }
 0x2e3   :  { %v180_v63 = vsel %vm178_vm5, %v110_v57, %v1036_v60  ;;  %v181_v6 = vsel %vm178_vm5, %v113_v58, %v1037_v62 }
 0x2e4   :  { %v1040_v0 = vpop.permute.xlu1 %1039  ;;  %v116_v2 = vpop.permute.xlu0 %115  ;;  %v184_v3 = vpack.c.bf16 %v180_v63, %v179_v61 }
 0x2e5   :  { %v1041_v4 = vunpack.i.l.bf16 %v1040_v0  ;;  %v1042_v5 = vunpack.i.h.bf16 %v1040_v0  ;;  %v979_v0 = vld [vmem:[%s1521_s3 + $0x2] ss:$0 sm:$0xff] }
 0x2e6   :  { %998 = vmatpush3.bf16.msra.mxu1 %v184_v3 }
 0x2e7   :  { %v182_v7 = vsel %vm178_vm5, %v116_v2, %v1041_v4  ;;  %999 = vmatprep.subr.bf16.mxu1 %v1132_v1  ;;  %v980_v4 = vld [vmem:[%s1521_s3 + $0x3] ss:$0 sm:$0xff] }
 0x2e8   :  { %v185_v8 = vpack.c.bf16 %v182_v7, %v181_v6  ;;  %v172_v9 = vpop.permute.xlu0 %171 }
 0x2e9   :  { %v183_v10 = vsel %vm178_vm5, %v1042_v5, %v172_v9 }
 0x2ea   :  { %v186_v11 = vpack.c.bf16 %v183_v10, %v183_v10  ;;  %1000 = vmatpush3.bf16.msra.mxu1 %v185_v8 }
 0x2eb   :  { %1001 = vmatprep.subr.bf16.mxu1 %v1132_v1 }
 0x2ec   :  { %v198_v12 = vsel %vm196_vm6, %v186_v11, 0 }
 0x2ee   :  { %1002 = vmatpush3.bf16.msra.mxu1 %v198_v12 }
 0x2f1   :  { %1004 = vmatmul.mubr.msk.bf16.vlgmr.msra.gmra.mrb[0].mxu1 %vm192_vm7, %v1067_v13 }
 0x2f5   :  { %v256_v19 = vpop.permute.xlu1 %255 }
 0x2f9   :  { %v261_v1 = vpop.permute.xlu0 %260  ;;  %v266_v28 = vpop.permute.xlu1 %265 }
 0x2fd   :  { %v271_v29 = vpop.permute.xlu1 %270 }
 0x3c4   :  { %v234_v14 = vpop.f32.mrb[0].mxu1 }
 0x3c5   :  { %243 = vrot.lane.b32.xlu0 %v234_v14, %s1142_s15  ;;  %v1005_v16 = vpop.f32.mrb[1].mxu1  ;;  %v1246_v20 = vadd.f32 %v256_v19, %v234_v14 }
 0x3c6   :  { %v237_v17 = vpop.f32.mrb[2].mxu1 }
 0x3c7   :  { %245 = vrot.lane.b32.xlu1 %v237_v17, %s1142_s15  ;;  %v1006_v18 = vpop.f32.mrb[3].mxu1  ;;  %v1248_v21 = vadd.f32 %v261_v1, %v237_v17  ;;  %v279_v22 = vsel %vm178_vm5, %v1246_v20, 0.0  ;;  %v291_v26 = vmul.f32 %v1246_v20, %v1246_v20 }
 0x3c9   :  { %v292_v23 = vmul.f32 %v1248_v21, %v1248_v21  ;;  %v282_v25 = vsel %vm178_vm5, %v1248_v21, 0.0  ;;  %v295_v27 = vsel %vm178_vm5, %v291_v26, 0.0 }
 0x3cb   :  { %v298_v24 = vsel %vm178_vm5, %v292_v23, 0.0 }
 0x3e4   :  { %280 = vadd.xlane.f32.xlu0 %v279_v22 }
 0x3e8   :  { %299 = vadd.xlane.f32.xlu0 %v298_v24 }
 0x3eb   :  { %283 = vadd.xlane.f32.xlu1 %v282_v25 }
 0x3ef   :  { %296 = vadd.xlane.f32.xlu1 %v295_v27 }
 0x437   :  { %v244_v30 = vpop.permute.xlu0 %243 }
 0x438   :  { %v1260_v31 = vadd.f32 %v266_v28, %v244_v30 }
 0x439   :  { %v246_v32 = vpop.permute.xlu1 %245 }
 0x43a   :  { %v1262_v33 = vadd.f32 %v271_v29, %v246_v32  ;;  %v285_v34 = vsel %vm178_vm5, %v1260_v31, 0.0  ;;  %v293_v35 = vmul.f32 %v1260_v31, %v1260_v31 }
 0x43b   :  { %286 = vadd.xlane.f32.xlu0 %v285_v34 }
 0x43c   :  { %v301_v36 = vsel %vm178_vm5, %v293_v35, 0.0  ;;  %v288_v37 = vsel %vm178_vm5, %v1262_v33, 0.0  ;;  %v294_v38 = vmul.f32 %v1262_v33, %v1262_v33 }
 0x43d   :  { %302 = vadd.xlane.f32.xlu1 %v301_v36 }
 0x43e   :  { %v304_v39 = vsel %vm178_vm5, %v294_v38, 0.0 }
 0x43f   :  { %289 = vadd.xlane.f32.xlu0 %v288_v37 }
 0x443   :  { %305 = vadd.xlane.f32.xlu0 %v304_v39 }
 0x44e   :  { %408 = vperm.xlu1 %1045, %v1214_v52  }
 0x452   :  { %416 = vperm.xlu1 %1045, %v1226_v55  }
 0x456   :  { %420 = vperm.xlu1 %1045, %v1233_v56  }
 0x459   :  { %412 = vperm.xlu0 %1046, %v1221_v54  }
 0x45a   :  { %1047 = vset.pattern.permute.xlu1 %v1143_v40 }
 0x45b   :  { %448 = vperm.xlu1 %1047, %v1214_v52  }
 0x45d   :  { %1049 = vset.pattern.permute.xlu0 %v1144_v41 }
 0x45e   :  { %376 = vperm.xlu0 %1049, %v1226_v55  }
 0x45f   :  { %452 = vperm.xlu1 %1047, %v1221_v54  }
 0x462   :  { %1051 = vset.pattern.permute.xlu0 %v1145_v42 }
 0x463   :  { %456 = vperm.xlu1 %1047, %v1226_v55   ;;  %392 = vperm.xlu0 %1051, %v1221_v54  }
 0x467   :  { %460 = vperm.xlu1 %1047, %v1233_v56  }
 0x46b   :  { %1048 = vset.pattern.permute.xlu1 %v1144_v41 }
 0x46c   :  { %368 = vperm.xlu1 %1048, %v1214_v52  }
 0x470   :  { %372 = vperm.xlu1 %1048, %v1221_v54  }
 0x471   :  { %v281_v44 = vpop.xlane.xlu0 %280 }
 0x472   :  { %v307_v46 = vmul.f32 0.03448276, %v281_v44 }
 0x474   :  { %380 = vperm.xlu1 %1048, %v1233_v56   ;;  %v315_v48 = vmul.f32 %v307_v46, %v307_v46  ;;  %v323_v62 = vsub.f32 %v1246_v20, %v307_v46 }
 0x475   :  { %v300_v53 = vpop.xlane.xlu0 %299 }
 0x476   :  { %v312_v58 = vmul.f32 0.03448276, %v300_v53 }
 0x478   :  { %1050 = vset.pattern.permute.xlu1 %v1145_v42  ;;  %v284_v43 = vpop.xlane.xlu1 %283 }
 0x479   :  { %388 = vperm.xlu1 %1050, %v1214_v52   ;;  %v308_v50 = vmul.f32 0.03448276, %v284_v43 }
 0x47b   :  { %v316_v57 = vmul.f32 %v308_v50, %v308_v50  ;;  %v324_v5 = vsub.f32 %v1248_v21, %v308_v50 }
 0x47c   :  { %v297_v45 = vpop.xlane.xlu1 %296 }
 0x47d   :  { %396 = vperm.xlu1 %1050, %v1226_v55   ;;  %v311_v47 = vmul.f32 0.03448276, %v297_v45  ;;  %v320_v59 = vsub.f32 %v312_v58, %v316_v57  ;;  %v1146_v57 = vmov 9  }
 0x47e   :  { %1052 = vset.pattern.permute.xlu0 %v1146_v57 }
 0x47f   :  { %v319_v49 = vsub.f32 %v311_v47, %v315_v48  ;;  %v328_v60 = vadd.f32 1e-05, %v320_v59 }
 0x481   :  { %400 = vperm.xlu1 %1050, %v1233_v56   ;;  %v327_v51 = vadd.f32 1e-05, %v319_v49 }
 0x483   :  { %1072 = vrsqrt.f32 %v327_v51 }
 0x484   :  { %1074 = vrsqrt.f32 %v328_v60 }
 0x485   :  { %1053 = vset.pattern.permute.xlu1 %v1146_v57 }
 0x48d   :  { %v1073_v61 = vpop.eup %1072 }
 0x48e   :  { %v335_v63 = vmul.f32 %v1073_v61, %v323_v62  ;;  %v1075_v3 = vpop.eup %1074 }
 0x48f   :  { %v336_v7 = vmul.f32 %v1075_v3, %v324_v5 }
 0x490   :  { %v343_v2 = vmul.f32 %v979_v0, %v335_v63 }
 0x491   :  { %v344_v14 = vmul.f32 %v979_v0, %v336_v7 }
 0x492   :  { %v351_v6 = vadd.f32 %v980_v4, %v343_v2 }
 0x493   :  { %v352_v22 = vadd.f32 %v980_v4, %v344_v14 }
 0x494   :  { %v359_v11 = vmul.f32 0.2, %v351_v6  ;;  %vm355_vm8 = vcmp.ge.f32.partialorder %v351_v6, 0.0 }
 0x495   :  { %v360_v27 = vmul.f32 0.2, %v352_v22  ;;  %vm356_vm9 = vcmp.ge.f32.partialorder %v352_v22, 0.0 }
 0x496   :  { %v1298_v18 = vsel %vm355_vm8, %v351_v6, %v359_v11 }
 0x497   :  { %v364_v32 = vsel %vm356_vm9, %v352_v22, %v360_v27 }
 0x4c8   :  { %v287_v8 = vpop.xlane.xlu0 %286 }
 0x4c9   :  { %v309_v9 = vmul.f32 0.03448276, %v287_v8 }
 0x4ca   :  { %v303_v10 = vpop.xlane.xlu1 %302 }
 0x4cb   :  { %v317_v12 = vmul.f32 %v309_v9, %v309_v9  ;;  %v313_v13 = vmul.f32 0.03448276, %v303_v10  ;;  %v325_v35 = vsub.f32 %v1260_v31, %v309_v9 }
 0x4cc   :  { %v290_v15 = vpop.xlane.xlu0 %289 }
 0x4cd   :  { %v321_v16 = vsub.f32 %v313_v13, %v317_v12  ;;  %v310_v17 = vmul.f32 0.03448276, %v290_v15 }
 0x4ce   :  { %v409_v19 = vpop.permute.xlu1 %408 }
 0x4cf   :  { %v329_v1 = vadd.f32 1e-05, %v321_v16  ;;  %v423_v20 = vmul.f32 %v409_v19, %v1298_v18  ;;  %v318_v23 = vmul.f32 %v310_v17, %v310_v17  ;;  %v326_v43 = vsub.f32 %v1262_v33, %v310_v17 }
 0x4d0   :  { %v306_v21 = vpop.xlane.xlu0 %305 }
 0x4d1   :  { %1076 = vrsqrt.f32 %v329_v1  ;;  %v314_v24 = vmul.f32 0.03448276, %v306_v21  ;;  %431 = vrot.lane.b32.xlu0 %v423_v20, %s1136_s26 }
 0x4d2   :  { %v417_v25 = vpop.permute.xlu1 %416 }
 0x4d3   :  { %v322_v26 = vsub.f32 %v314_v24, %v318_v23 }
 0x4d5   :  { %v330_v28 = vadd.f32 1e-05, %v322_v26 }
 0x4d6   :  { %v421_v29 = vpop.permute.xlu1 %420 }
 0x4d7   :  { %1078 = vrsqrt.f32 %v330_v28 }
 0x4d8   :  { %v413_v30 = vpop.permute.xlu0 %412 }
 0x4d9   :  { %v424_v34 = vmul.f32 %v413_v30, %v364_v32 }
 0x4da   :  { %v449_v36 = vpop.permute.xlu1 %448 }
 0x4db   :  { %v1077_v37 = vpop.eup %1076  ;;  %v463_v38 = vmul.f32 %v449_v36, %v1298_v18  ;;  %433 = vrot.lane.b32.xlu1 %v424_v34, %s1136_s26 }
 0x4dc   :  { %v337_v39 = vmul.f32 %v1077_v37, %v325_v35 }
 0x4dd   :  { %471 = vrot.lane.b32.xlu0 %v463_v38, %s1139_s29  ;;  %v377_v3 = vpop.permute.xlu0 %376 }
 0x4de   :  { %v345_v40 = vmul.f32 %v979_v0, %v337_v39  ;;  %v453_v41 = vpop.permute.xlu1 %452 }
 0x4df   :  { %v464_v42 = vmul.f32 %v453_v41, %v364_v32 }
 0x4e0   :  { %v353_v44 = vadd.f32 %v980_v4, %v345_v40 }
 0x4e1   :  { %v1079_v45 = vpop.eup %1078  ;;  %473 = vrot.lane.b32.xlu1 %v464_v42, %s1139_s29  ;;  %v1147_v42 = vmov 10  }
 0x4e2   :  { %vm357_vm10 = vcmp.ge.f32.partialorder %v353_v44, 0.0  ;;  %v361_v31 = vmul.f32 0.2, %v353_v44  ;;  %v338_v46 = vmul.f32 %v1079_v45, %v326_v43  ;;  %v457_v53 = vpop.permute.xlu1 %456  ;;  %v393_v5 = vpop.permute.xlu0 %392  ;;  %v1148_v43 = vmov 8  }
 0x4e4   :  { %v365_v47 = vsel %vm357_vm10, %v353_v44, %v361_v31  ;;  %v346_v48 = vmul.f32 %v979_v0, %v338_v46  ;;  %v1149_v44 = vmov 2  }
 0x4e5   :  { %v425_v49 = vmul.f32 %v417_v25, %v365_v47  ;;  %v465_v33 = vmul.f32 %v457_v53, %v365_v47  ;;  %v385_v23 = vmul.f32 %v377_v3, %v365_v47 }
 0x4e6   :  { %v354_v50 = vadd.f32 %v980_v4, %v346_v48  ;;  %v461_v60 = vpop.permute.xlu1 %460 }
 0x4e7   :  { %435 = vrot.lane.b32.xlu0 %v425_v49, %s1136_s26 }
 0x4e8   :  { %vm358_vm11 = vcmp.ge.f32.partialorder %v354_v50, 0.0  ;;  %v362_v51 = vmul.f32 0.2, %v354_v50 }
 0x4ea   :  { %v366_v58 = vsel %vm358_vm11, %v354_v50, %v362_v51 }
 0x4eb   :  { %v426_v59 = vmul.f32 %v421_v29, %v366_v58  ;;  %475 = vrot.lane.b32.xlu0 %v465_v33, %s1139_s29  ;;  %v466_v61 = vmul.f32 %v461_v60, %v366_v58  ;;  %v369_v62 = vpop.permute.xlu1 %368 }
 0x4ec   :  { %v383_v6 = vmul.f32 %v369_v62, %v1298_v18 }
 0x4ed   :  { %437 = vrot.lane.b32.xlu1 %v426_v59, %s1136_s26 }
 0x4ef   :  { %v373_v63 = vpop.permute.xlu1 %372 }
 0x4f0   :  { %v384_v9 = vmul.f32 %v373_v63, %v364_v32 }
 0x4f1   :  { %477 = vrot.lane.b32.xlu1 %v466_v61, %s1139_s29 }
 0x4f2   :  { %v404_v14 = vadd.f32 %v393_v5, %v384_v9  ;;  %v1366_v9 = vld [vmem:[%s1521_s3 + $0x5] ss:$0 sm:$0xff] }
 0x4f3   :  { %v381_v0 = vpop.permute.xlu1 %380 }
 0x4f4   :  { %v386_v29 = vmul.f32 %v381_v0, %v366_v58 }
 0x4f8   :  { %v389_v2 = vpop.permute.xlu1 %388 }
 0x4f9   :  { %v403_v10 = vadd.f32 %v389_v2, %v383_v6  ;;  %v1361_v6 = vld [vmem:[%s1521_s3 + $0x4] ss:$0 sm:$0xff] }
 0x4fc   :  { %v397_v4 = vpop.permute.xlu1 %396 }
 0x4fd   :  { %v405_v25 = vadd.f32 %v397_v4, %v385_v23 }
 0x500   :  { %v401_v7 = vpop.permute.xlu1 %400 }
 0x501   :  { %v406_v34 = vadd.f32 %v401_v7, %v386_v29 }
 0x543   :  { %v432_v8 = vpop.permute.xlu0 %431 }
 0x544   :  { %v443_v11 = vadd.f32 %v432_v8, %v403_v10 }
 0x54d   :  { %v434_v12 = vpop.permute.xlu1 %433 }
 0x54e   :  { %v444_v16 = vadd.f32 %v434_v12, %v404_v14 }
 0x54f   :  { %v472_v13 = vpop.permute.xlu0 %471 }
 0x550   :  { %v1313_v15 = vadd.f32 %v472_v13, %v443_v11 }
 0x552   :  { %v490_v17 = vsel %vm489_vm12, %v1313_v15, 0.0  ;;  %v502_v19 = vmul.f32 %v1313_v15, %v1313_v15 }
 0x553   :  { %491 = vadd.xlane.f32.xlu0 %v490_v17  ;;  %v474_v18 = vpop.permute.xlu1 %473 }
 0x554   :  { %v1319_v1 = vadd.f32 %v474_v18, %v444_v16  ;;  %v506_v20 = vsel %vm489_vm12, %v502_v19, 0.0 }
 0x556   :  { %v493_v21 = vsel %vm489_vm12, %v1319_v1, 0.0  ;;  %v503_v22 = vmul.f32 %v1319_v1, %v1319_v1 }
 0x557   :  { %507 = vadd.xlane.f32.xlu0 %v506_v20  ;;  %494 = vadd.xlane.f32.xlu1 %v493_v21 }
 0x558   :  { %v509_v26 = vsel %vm489_vm12, %v503_v22, 0.0 }
 0x559   :  { %v436_v24 = vpop.permute.xlu0 %435 }
 0x55a   :  { %v445_v27 = vadd.f32 %v436_v24, %v405_v25 }
 0x55b   :  { %510 = vadd.xlane.f32.xlu1 %v509_v26 }
 0x55d   :  { %v476_v28 = vpop.permute.xlu0 %475 }
 0x55e   :  { %v1327_v30 = vadd.f32 %v476_v28, %v445_v27 }
 0x55f   :  { %v438_v32 = vpop.permute.xlu1 %437 }
 0x560   :  { %v496_v35 = vsel %vm489_vm12, %v1327_v30, 0.0  ;;  %v446_v36 = vadd.f32 %v438_v32, %v406_v34  ;;  %v504_v40 = vmul.f32 %v1327_v30, %v1327_v30 }
 0x561   :  { %497 = vadd.xlane.f32.xlu0 %v496_v35 }
 0x562   :  { %v512_v41 = vsel %vm489_vm12, %v504_v40, 0.0 }
 0x563   :  { %v478_v37 = vpop.permute.xlu1 %477 }
 0x564   :  { %v1331_v38 = vadd.f32 %v478_v37, %v446_v36 }
 0x566   :  { %v499_v39 = vsel %vm489_vm12, %v1331_v38, 0.0  ;;  %v505_v45 = vmul.f32 %v1331_v38, %v1331_v38 }
 0x567   :  { %500 = vadd.xlane.f32.xlu0 %v499_v39 }
 0x568   :  { %v515_v31 = vsel %vm489_vm12, %v505_v45, 0.0  ;;  %v1151_v45 = vmov 11  }
 0x56b   :  { %513 = vadd.xlane.f32.xlu0 %v512_v41 }
 0x56c   :  { %623 = vperm.xlu1 %1053, %v1221_v54  }
 0x570   :  { %627 = vperm.xlu1 %1053, %v1226_v55  }
 0x574   :  { %631 = vperm.xlu1 %1053, %v1233_v56  }
 0x578   :  { %1054 = vset.pattern.permute.xlu1 %v1147_v42 }
 0x579   :  { %659 = vperm.xlu1 %1054, %v1214_v52  }
 0x57d   :  { %663 = vperm.xlu1 %1054, %v1221_v54  }
 0x581   :  { %667 = vperm.xlu1 %1054, %v1226_v55   ;;  %619 = vperm.xlu0 %1052, %v1214_v52  }
 0x585   :  { %671 = vperm.xlu1 %1054, %v1233_v56   ;;  %1056 = vset.pattern.permute.xlu0 %v1148_v43 }
 0x586   :  { %583 = vperm.xlu0 %1056, %v1221_v54  }
 0x589   :  { %1055 = vset.pattern.permute.xlu1 %v1148_v43 }
 0x58a   :  { %1057 = vset.pattern.permute.xlu0 %v1149_v44 }
 0x58b   :  { %599 = vperm.xlu0 %1057, %v1214_v52  }
 0x58f   :  { %611 = vperm.xlu0 %1057, %v1233_v56  }
 0x593   :  { %1059 = vset.pattern.permute.xlu0 %v1151_v45 }
 0x5a9   :  { %516 = vadd.xlane.f32.xlu1 %v515_v31 }
 0x5ba   :  { %579 = vperm.xlu1 %1055, %v1214_v52  }
 0x5be   :  { %587 = vperm.xlu1 %1055, %v1226_v55  }
 0x5c2   :  { %591 = vperm.xlu1 %1055, %v1233_v56  }
 0x5c6   :  { %1058 = vset.pattern.permute.xlu1 %v1149_v44 }
 0x5c7   :  { %603 = vperm.xlu1 %1058, %v1221_v54  }
 0x5cb   :  { %607 = vperm.xlu1 %1058, %v1226_v55  }
 0x5cf   :  { %1060 = vset.pattern.permute.xlu1 %v1151_v45 }
 0x5e0   :  { %v492_v46 = vpop.xlane.xlu0 %491 }
 0x5e1   :  { %v518_v47 = vmul.f32 0.04, %v492_v46 }
 0x5e3   :  { %v526_v50 = vmul.f32 %v518_v47, %v518_v47  ;;  %v534_v2 = vsub.f32 %v1313_v15, %v518_v47 }
 0x5e4   :  { %v508_v48 = vpop.xlane.xlu0 %507  ;;  %v495_v49 = vpop.xlane.xlu1 %494 }
 0x5e5   :  { %v522_v51 = vmul.f32 0.04, %v508_v48  ;;  %v519_v53 = vmul.f32 0.04, %v495_v49 }
 0x5e7   :  { %v530_v57 = vsub.f32 %v522_v51, %v526_v50  ;;  %v527_v59 = vmul.f32 %v519_v53, %v519_v53  ;;  %v535_v10 = vsub.f32 %v1319_v1, %v519_v53 }
 0x5e8   :  { %v511_v33 = vpop.xlane.xlu1 %510 }
 0x5e9   :  { %v538_v58 = vadd.f32 1e-05, %v530_v57  ;;  %v523_v60 = vmul.f32 0.04, %v511_v33 }
 0x5eb   :  { %1080 = vrsqrt.f32 %v538_v58  ;;  %v531_v61 = vsub.f32 %v523_v60, %v527_v59 }
 0x5ec   :  { %v624_v63 = vpop.permute.xlu1 %623 }
 0x5ed   :  { %v539_v62 = vadd.f32 1e-05, %v531_v61 }
 0x5ee   :  { %v498_v0 = vpop.xlane.xlu0 %497 }
 0x5ef   :  { %1082 = vrsqrt.f32 %v539_v62  ;;  %v520_v7 = vmul.f32 0.04, %v498_v0 }
 0x5f0   :  { %v628_v3 = vpop.permute.xlu1 %627 }
 0x5f1   :  { %v528_v14 = vmul.f32 %v520_v7, %v520_v7  ;;  %v536_v36 = vsub.f32 %v1327_v30, %v520_v7 }
 0x5f4   :  { %v501_v4 = vpop.xlane.xlu0 %500  ;;  %v1370_v17 = vpop.permute.xlu1 %631 }
 0x5f5   :  { %v1081_v5 = vpop.eup %1080  ;;  %v521_v47 = vmul.f32 0.04, %v501_v4 }
 0x5f6   :  { %v546_v8 = vmul.f32 %v1081_v5, %v534_v2 }
 0x5f7   :  { %v529_v49 = vmul.f32 %v521_v47, %v521_v47  ;;  %v537_v33 = vsub.f32 %v1331_v38, %v521_v47 }
 0x5f8   :  { %v514_v11 = vpop.xlane.xlu0 %513  ;;  %v554_v12 = vmul.f32 %v1361_v6, %v546_v8  ;;  %v660_v25 = vpop.permute.xlu1 %659 }
 0x5f9   :  { %v1083_v13 = vpop.eup %1082  ;;  %v524_v15 = vmul.f32 0.04, %v514_v11 }
 0x5fa   :  { %v547_v16 = vmul.f32 %v1083_v13, %v535_v10  ;;  %v562_v19 = vadd.f32 %v1366_v9, %v554_v12 }
 0x5fb   :  { %v532_v18 = vsub.f32 %v524_v15, %v528_v14 }
 0x5fc   :  { %v555_v20 = vmul.f32 %v1361_v6, %v547_v16  ;;  %v570_v21 = vmul.f32 0.2, %v562_v19  ;;  %vm566_vm13 = vcmp.ge.f32.partialorder %v562_v19, 0.0  ;;  %v664_v34 = vpop.permute.xlu1 %663 }
 0x5fd   :  { %v540_v22 = vadd.f32 1e-05, %v532_v18 }
 0x5fe   :  { %v563_v23 = vadd.f32 %v1366_v9, %v555_v20  ;;  %v574_v24 = vsel %vm566_vm13, %v562_v19, %v570_v21 }
 0x5ff   :  { %1084 = vrsqrt.f32 %v540_v22  ;;  %v674_v32 = vmul.f32 %v660_v25, %v574_v24 }
 0x600   :  { %vm567_vm14 = vcmp.ge.f32.partialorder %v563_v23, 0.0  ;;  %v571_v1 = vmul.f32 0.2, %v563_v23  ;;  %v620_v26 = vpop.permute.xlu0 %619  ;;  %v668_v31 = vpop.permute.xlu1 %667 }
 0x601   :  { %v634_v27 = vmul.f32 %v620_v26, %v574_v24 }
 0x602   :  { %v575_v28 = vsel %vm567_vm14, %v563_v23, %v571_v1 }
 0x603   :  { %v635_v29 = vmul.f32 %v624_v63, %v575_v28  ;;  %642 = vrot.lane.b32.xlu1 %v634_v27, %s1138_s28  ;;  %v675_v35 = vmul.f32 %v664_v34, %v575_v28 }
 0x604   :  { %v672_v30 = vpop.permute.xlu1 %671 }
 0x605   :  { %644 = vrot.lane.b32.xlu0 %v635_v29, %s1138_s28  ;;  %v584_v59 = vpop.permute.xlu0 %583 }
 0x606   :  { %v595_v14 = vmul.f32 %v584_v59, %v575_v28 }
 0x607   :  { %682 = vrot.lane.b32.xlu1 %v674_v32, %s1150_s1 }
 0x609   :  { %v1085_v37 = vpop.eup %1084  ;;  %684 = vrot.lane.b32.xlu0 %v675_v35, %s1150_s1 }
 0x60a   :  { %v548_v39 = vmul.f32 %v1085_v37, %v536_v36  ;;  %v600_v63 = vpop.permute.xlu0 %599 }
 0x60c   :  { %v556_v40 = vmul.f32 %v1361_v6, %v548_v39 }
 0x60e   :  { %v564_v41 = vadd.f32 %v1366_v9, %v556_v40  ;;  %v612_v5 = vpop.permute.xlu0 %611 }
 0x610   :  { %vm568_vm15 = vcmp.ge.f32.partialorder %v564_v41, 0.0  ;;  %v572_v42 = vmul.f32 0.2, %v564_v41 }
 0x612   :  { %v576_v43 = vsel %vm568_vm15, %v564_v41, %v572_v42 }
 0x613   :  { %v636_v44 = vmul.f32 %v628_v3, %v576_v43  ;;  %v676_v46 = vmul.f32 %v668_v31, %v576_v43  ;;  %v1152_v31 = vmov 3  }
 0x615   :  { %646 = vrot.lane.b32.xlu1 %v636_v44, %s1138_s28 }
 0x619   :  { %686 = vrot.lane.b32.xlu1 %v676_v46, %s1150_s1  ;;  %v1153_v46 = vmov 12  }
 0x636   :  { %v517_v48 = vpop.xlane.xlu1 %516 }
 0x637   :  { %v525_v50 = vmul.f32 0.04, %v517_v48 }
 0x639   :  { %v533_v51 = vsub.f32 %v525_v50, %v529_v49 }
 0x63a   :  { %v580_v57 = vpop.permute.xlu1 %579 }
 0x63b   :  { %v541_v53 = vadd.f32 1e-05, %v533_v51 }
 0x63d   :  { %1086 = vrsqrt.f32 %v541_v53 }
 0x63e   :  { %v588_v61 = vpop.permute.xlu1 %587 }
 0x63f   :  { %v596_v28 = vmul.f32 %v588_v61, %v576_v43 }
 0x642   :  { %v592_v4 = vpop.permute.xlu1 %591 }
 0x646   :  { %v604_v11 = vpop.permute.xlu1 %603 }
 0x647   :  { %v1087_v58 = vpop.eup %1086  ;;  %v615_v16 = vadd.f32 %v604_v11, %v595_v14 }
 0x648   :  { %v549_v60 = vmul.f32 %v1087_v58, %v537_v33 }
 0x64a   :  { %v557_v62 = vmul.f32 %v1361_v6, %v549_v60  ;;  %v608_v12 = vpop.permute.xlu1 %607  ;;  %v594_v6 = vmul.f32 %v580_v57, %v574_v24 }
 0x64b   :  { %v616_v32 = vadd.f32 %v608_v12, %v596_v28  ;;  %v1430_v12 = vld [vmem:[%s1521_s3 + $0x6] ss:$0 sm:$0xff] }
 0x64c   :  { %v565_v0 = vadd.f32 %v1366_v9, %v557_v62  ;;  %v614_v9 = vadd.f32 %v600_v63, %v594_v6 }
 0x64e   :  { %vm569_vm0 = vcmp.ge.f32.partialorder %v565_v0, 0.0  ;;  %v573_v2 = vmul.f32 0.2, %v565_v0 }
 0x650   :  { %v577_v3 = vsel %vm569_vm0, %v565_v0, %v573_v2 }
 0x651   :  { %v597_v7 = vmul.f32 %v592_v4, %v577_v3  ;;  %v637_v8 = vmul.f32 %v1370_v17, %v577_v3  ;;  %v677_v38 = vmul.f32 %v672_v30, %v577_v3 }
 0x653   :  { %v617_v10 = vadd.f32 %v612_v5, %v597_v7  ;;  %648 = vrot.lane.b32.xlu0 %v637_v8, %s1138_s28 }
 0x657   :  { %688 = vrot.lane.b32.xlu0 %v677_v38, %s1150_s1 }
 0x675   :  { %v643_v13 = vpop.permute.xlu1 %642 }
 0x676   :  { %v654_v19 = vadd.f32 %v643_v13, %v614_v9 }
 0x677   :  { %v645_v15 = vpop.permute.xlu0 %644 }
 0x678   :  { %v655_v20 = vadd.f32 %v645_v15, %v615_v16  ;;  %v1437_v16 = vld [vmem:[%s1521_s3 + $0x7] ss:$0 sm:$0xff] }
 0x679   :  { %v683_v18 = vpop.permute.xlu1 %682 }
 0x67a   :  { %v1390_v21 = vadd.f32 %v683_v18, %v654_v19 }
 0x67b   :  { %v685_v17 = vpop.permute.xlu0 %684 }
 0x67c   :  { %v1392_v22 = vadd.f32 %v685_v17, %v655_v20  ;;  %v701_v23 = vsel %vm700_vm1, %v1390_v21, 0.0  ;;  %v713_v25 = vmul.f32 %v1390_v21, %v1390_v21 }
 0x67d   :  { %702 = vadd.xlane.f32.xlu1 %v701_v23 }
 0x67e   :  { %v704_v1 = vsel %vm700_vm1, %v1392_v22, 0.0  ;;  %v714_v24 = vmul.f32 %v1392_v22, %v1392_v22  ;;  %v717_v27 = vsel %vm700_vm1, %v713_v25, 0.0 }
 0x67f   :  { %705 = vadd.xlane.f32.xlu0 %v704_v1 }
 0x680   :  { %v720_v26 = vsel %vm700_vm1, %v714_v24, 0.0 }
 0x681   :  { %721 = vadd.xlane.f32.xlu1 %v720_v26 }
 0x683   :  { %718 = vadd.xlane.f32.xlu0 %v717_v27 }
 0x687   :  { %v647_v29 = vpop.permute.xlu1 %646 }
 0x688   :  { %v656_v34 = vadd.f32 %v647_v29, %v616_v32 }
 0x68b   :  { %v687_v35 = vpop.permute.xlu1 %686 }
 0x68c   :  { %v1404_v36 = vadd.f32 %v687_v35, %v656_v34 }
 0x68e   :  { %v707_v37 = vsel %vm700_vm1, %v1404_v36, 0.0  ;;  %v715_v39 = vmul.f32 %v1404_v36, %v1404_v36 }
 0x68f   :  { %708 = vadd.xlane.f32.xlu0 %v707_v37 }
 0x690   :  { %v723_v40 = vsel %vm700_vm1, %v715_v39, 0.0 }
 0x693   :  { %724 = vadd.xlane.f32.xlu0 %v723_v40 }
 0x6a9   :  { %790 = vperm.xlu0 %1059, %v1214_v52  }
 0x6ad   :  { %1063 = vset.pattern.permute.xlu0 %v1153_v46 }
 0x6c5   :  { %v649_v41 = vpop.permute.xlu0 %648 }
 0x6c6   :  { %v657_v42 = vadd.f32 %v649_v41, %v617_v10 }
 0x6c9   :  { %v689_v43 = vpop.permute.xlu0 %688 }
 0x6ca   :  { %v1412_v44 = vadd.f32 %v689_v43, %v657_v42 }
 0x6cc   :  { %v710_v45 = vsel %vm700_vm1, %v1412_v44, 0.0  ;;  %v716_v30 = vmul.f32 %v1412_v44, %v1412_v44 }
 0x6cd   :  { %711 = vadd.xlane.f32.xlu1 %v710_v45 }
 0x6ce   :  { %v726_v47 = vsel %vm700_vm1, %v716_v30, 0.0 }
 0x6de   :  { %794 = vperm.xlu1 %1060, %v1221_v54  }
 0x6e2   :  { %798 = vperm.xlu1 %1060, %v1226_v55  }
 0x6e6   :  { %802 = vperm.xlu1 %1060, %v1233_v56  }
 0x6ea   :  { %1061 = vset.pattern.permute.xlu1 %v1152_v31 }
 0x6eb   :  { %810 = vperm.xlu1 %1061, %v1214_v52  }
 0x6ef   :  { %814 = vperm.xlu1 %1061, %v1221_v54  }
 0x6f3   :  { %818 = vperm.xlu1 %1061, %v1226_v55  }
 0x70a   :  { %v703_v49 = vpop.xlane.xlu1 %702 }
 0x70b   :  { %v729_v51 = vmul.f32 0.05263158, %v703_v49 }
 0x70c   :  { %v706_v48 = vpop.xlane.xlu0 %705 }
 0x70d   :  { %v737_v54 = vmul.f32 %v729_v51, %v729_v51  ;;  %v730_v57 = vmul.f32 0.05263158, %v706_v48  ;;  %v745_v10 = vsub.f32 %v1390_v21, %v729_v51 }
 0x70e   :  { %v722_v33 = vpop.xlane.xlu1 %721 }
 0x70f   :  { %v738_v59 = vmul.f32 %v730_v57, %v730_v57  ;;  %v734_v60 = vmul.f32 0.05263158, %v722_v33  ;;  %v746_v6 = vsub.f32 %v1392_v22, %v730_v57  ;;  %v1154_v57 = vmov 4   ;;  %v1105_v33 = vld [vmem:[%s1522_s4 + $0x8] sm:$0xff] }
 0x710   :  { %v719_v50 = vpop.xlane.xlu0 %718 }
 0x711   :  { %v733_v52 = vmul.f32 0.05263158, %v719_v50  ;;  %v742_v0 = vsub.f32 %v734_v60, %v738_v59 }
 0x713   :  { %v741_v58 = vsub.f32 %v733_v52, %v737_v54  ;;  %v750_v4 = vadd.f32 1e-05, %v742_v0  ;;  %v1104_v54 = vld [vmem:[%s1522_s4] sm:$0xff] }
 0x715   :  { %v749_v62 = vadd.f32 1e-05, %v741_v58  ;;  %v1106_v58 = vld [vmem:[%s1522_s4 + $0x10] sm:$0xff] }
 0x717   :  { %727 = vadd.xlane.f32.xlu1 %v726_v47  ;;  %1088 = vrsqrt.f32 %v749_v62 }
 0x718   :  { %1090 = vrsqrt.f32 %v750_v4 }
 0x71c   :  { %v709_v53 = vpop.xlane.xlu0 %708 }
 0x71d   :  { %v731_v63 = vmul.f32 0.05263158, %v709_v53 }
 0x71f   :  { %v739_v3 = vmul.f32 %v731_v63, %v731_v63  ;;  %v747_v19 = vsub.f32 %v1404_v36, %v731_v63 }
 0x720   :  { %v725_v61 = vpop.xlane.xlu0 %724 }
 0x721   :  { %v735_v2 = vmul.f32 0.05263158, %v725_v61  ;;  %v1089_v8 = vpop.eup %1088 }
 0x722   :  { %v757_v38 = vmul.f32 %v1089_v8, %v745_v10  ;;  %v1091_v11 = vpop.eup %1090 }
 0x723   :  { %v743_v5 = vsub.f32 %v735_v2, %v739_v3  ;;  %v758_v9 = vmul.f32 %v1091_v11, %v746_v6 }
 0x724   :  { %v765_v13 = vmul.f32 %v1430_v12, %v757_v38 }
 0x725   :  { %v751_v7 = vadd.f32 1e-05, %v743_v5  ;;  %v766_v21 = vmul.f32 %v1430_v12, %v758_v9 }
 0x726   :  { %v773_v18 = vadd.f32 %v1437_v16, %v765_v13 }
 0x727   :  { %1092 = vrsqrt.f32 %v751_v7  ;;  %v774_v1 = vadd.f32 %v1437_v16, %v766_v21 }
 0x728   :  { %822 = vperm.xlu1 %1061, %v1233_v56   ;;  %v781_v23 = vmul.f32 0.2, %v773_v18  ;;  %vm777_vm2 = vcmp.ge.f32.partialorder %v773_v18, 0.0  ;;  %v791_v25 = vpop.permute.xlu0 %790 }
 0x729   :  { %v782_v28 = vmul.f32 0.2, %v774_v1  ;;  %vm778_vm3 = vcmp.ge.f32.partialorder %v774_v1, 0.0 }
 0x72a   :  { %v785_v26 = vsel %vm777_vm2, %v773_v18, %v781_v23 }
 0x72b   :  { %v805_v32 = vmul.f32 %v791_v25, %v785_v26  ;;  %v786_v36 = vsel %vm778_vm3, %v774_v1, %v782_v28 }
 0x72c   :  { %1062 = vset.pattern.permute.xlu1 %v1153_v46 }
 0x731   :  { %v1093_v15 = vpop.eup %1092 }
 0x732   :  { %v759_v17 = vmul.f32 %v1093_v15, %v747_v19 }
 0x734   :  { %v767_v24 = vmul.f32 %v1430_v12, %v759_v17 }
 0x736   :  { %v775_v29 = vadd.f32 %v1437_v16, %v767_v24 }
 0x738   :  { %v783_v37 = vmul.f32 0.2, %v775_v29  ;;  %vm779_vm4 = vcmp.ge.f32.partialorder %v775_v29, 0.0 }
 0x73a   :  { %v787_v45 = vsel %vm779_vm4, %v775_v29, %v783_v37 }
 0x75a   :  { %v712_v14 = vpop.xlane.xlu1 %711 }
 0x75b   :  { %v732_v59 = vmul.f32 0.05263158, %v712_v14 }
 0x75d   :  { %v740_v60 = vmul.f32 %v732_v59, %v732_v59  ;;  %v748_v0 = vsub.f32 %v1412_v44, %v732_v59 }
 0x75e   :  { %v795_v20 = vpop.permute.xlu1 %794 }
 0x75f   :  { %v806_v39 = vmul.f32 %v795_v20, %v786_v36 }
 0x762   :  { %v799_v22 = vpop.permute.xlu1 %798 }
 0x763   :  { %v807_v31 = vmul.f32 %v799_v22, %v787_v45 }
 0x766   :  { %v803_v27 = vpop.permute.xlu1 %802 }
 0x76a   :  { %v811_v34 = vpop.permute.xlu1 %810 }
 0x76b   :  { %v1445_v35 = vadd.f32 %v811_v34, %v805_v32 }
 0x76d   :  { %v829_v40 = vsel %vm700_vm1, %v1445_v35, 0.0  ;;  %v841_v41 = vmul.f32 %v1445_v35, %v1445_v35 }
 0x76e   :  { %830 = vadd.xlane.f32.xlu1 %v829_v40  ;;  %v815_v42 = vpop.permute.xlu1 %814 }
 0x76f   :  { %v1451_v43 = vadd.f32 %v815_v42, %v806_v39  ;;  %v845_v46 = vsel %vm700_vm1, %v841_v41, 0.0 }
 0x771   :  { %v832_v30 = vsel %vm700_vm1, %v1451_v43, 0.0  ;;  %v842_v47 = vmul.f32 %v1451_v43, %v1451_v43 }
 0x772   :  { %846 = vadd.xlane.f32.xlu1 %v845_v46  ;;  %833 = vadd.xlane.f32.xlu0 %v832_v30  ;;  %v819_v48 = vpop.permute.xlu1 %818 }
 0x773   :  { %v1458_v49 = vadd.f32 %v819_v48, %v807_v31  ;;  %v848_v50 = vsel %vm700_vm1, %v842_v47, 0.0 }
 0x775   :  { %v843_v51 = vmul.f32 %v1458_v49, %v1458_v49  ;;  %v835_v53 = vsel %vm700_vm1, %v1458_v49, 0.0 }
 0x776   :  { %849 = vadd.xlane.f32.xlu0 %v848_v50 }
 0x777   :  { %v851_v52 = vsel %vm700_vm1, %v843_v51, 0.0 }
 0x778   :  { %852 = vadd.xlane.f32.xlu1 %v851_v52 }
 0x77a   :  { %836 = vadd.xlane.f32.xlu0 %v835_v53 }
 0x789   :  { %910 = vperm.xlu1 %1062, %v1104_v54  }
 0x78d   :  { %918 = vperm.xlu1 %1062, %v1226_v55   ;;  %v1107_v55 = vld [vmem:[%s1522_s4 + $0x18] sm:$0xff]  ;;  %s1155_s4 = smov [#allocation2]  }
 0x78e   :  { %s962_s8 = sshll.u32 %s1155_s4, 4  ;;  %s963_s8 = int_to_ptr.vmem [resolvable:$true] %s962_s8 }
 0x78f   :  { %s1108_s9 = scalar_lea.vmem %s963_s8, 512  ;;  %p1113_p1 = scmp.lt.s32.totalorder %s963_s8, %s963_s8 }
 0x790   :  { %p1109_p0 = scmp.ne.s32.totalorder %s963_s8, %s1108_s9  ;;  %p1114_p2 = scmp.lt.s32.totalorder %s1108_s9, %s1108_s9 }
 0x791   :  { %922 = vperm.xlu1 %1062, %v1233_v56  }
 0x792   :  { %p1115_p3 = por %p1114_p2, %p1113_p1 }
 0x794   :  { %p1116_p4 = pnand %p1115_p3, %p1109_p0 }
 0x795   :  { %1064 = vset.pattern.permute.xlu1 %v1154_v57 }
 0x796   :  { %930 = vperm.xlu1 %1064, %v1104_v54  }
 0x79a   :  { %934 = vperm.xlu1 %1064, %v1105_v33  }
 0x79e   :  { %938 = vperm.xlu1 %1064, %v1106_v58  }
 0x7a2   :  { %942 = vperm.xlu1 %1064, %v1107_v55  }
 0x7a4   :  { %v728_v56 = vpop.xlane.xlu1 %727 }
 0x7a5   :  { %v736_v61 = vmul.f32 0.05263158, %v728_v56 }
 0x7a7   :  { %v744_v62 = vsub.f32 %v736_v61, %v740_v60 }
 0x7a8   :  { %v823_v38 = vpop.permute.xlu1 %822 }
 0x7a9   :  { %v752_v63 = vadd.f32 1e-05, %v744_v62 }
 0x7ab   :  { %1094 = vrsqrt.f32 %v752_v63 }
 0x7b5   :  { %v1095_v2 = vpop.eup %1094 }
 0x7b6   :  { %v760_v3 = vmul.f32 %v1095_v2, %v748_v0 }
 0x7b8   :  { %v768_v4 = vmul.f32 %v1430_v12, %v760_v3 }
 0x7ba   :  { %v776_v5 = vadd.f32 %v1437_v16, %v768_v4 }
 0x7bc   :  { %vm780_vm5 = vcmp.ge.f32.partialorder %v776_v5, 0.0  ;;  %v784_v7 = vmul.f32 0.2, %v776_v5 }
 0x7be   :  { %v788_v8 = vsel %vm780_vm5, %v776_v5, %v784_v7 }
 0x7bf   :  { %v808_v10 = vmul.f32 %v803_v27, %v788_v8 }
 0x7c1   :  { %v1483_v11 = vadd.f32 %v823_v38, %v808_v10 }
 0x7c3   :  { %v838_v6 = vsel %vm700_vm1, %v1483_v11, 0.0  ;;  %v844_v13 = vmul.f32 %v1483_v11, %v1483_v11 }
 0x7c4   :  { %839 = vadd.xlane.f32.xlu0 %v838_v6 }
 0x7c5   :  { %v854_v44 = vsel %vm700_vm1, %v844_v13, 0.0 }
 0x7c8   :  { %855 = vadd.xlane.f32.xlu0 %v854_v44 }
 0x7de   :  { %914 = vperm.xlu0 %1063, %v1105_v33  }
 0x7e2   :  { %1065 = vset.pattern.permute.xlu0 %v1154_v57 }
 0x7fb   :  { %v831_v14 = vpop.xlane.xlu1 %830 }
 0x7fc   :  { %v857_v9 = vmul.f32 0.05263158, %v831_v14 }
 0x7fe   :  { %v865_v18 = vmul.f32 %v857_v9, %v857_v9  ;;  %v873_v41 = vsub.f32 %v1445_v35, %v857_v9 }
 0x7ff   :  { %v834_v15 = vpop.xlane.xlu0 %833  ;;  %v847_v19 = vpop.xlane.xlu1 %846 }
 0x800   :  { %v858_v20 = vmul.f32 0.05263158, %v834_v15  ;;  %v861_v21 = vmul.f32 0.05263158, %v847_v19 }
 0x802   :  { %v869_v17 = vsub.f32 %v861_v21, %v865_v18  ;;  %v866_v22 = vmul.f32 %v858_v20, %v858_v20  ;;  %v874_v31 = vsub.f32 %v1451_v43, %v858_v20 }
 0x803   :  { %v850_v23 = vpop.xlane.xlu0 %849 }
 0x804   :  { %v877_v1 = vadd.f32 1e-05, %v869_v17  ;;  %v862_v24 = vmul.f32 0.05263158, %v850_v23 }
 0x805   :  { %v853_v25 = vpop.xlane.xlu1 %852 }
 0x806   :  { %1096 = vrsqrt.f32 %v877_v1  ;;  %v870_v26 = vsub.f32 %v862_v24, %v866_v22  ;;  %v863_v34 = vmul.f32 0.05263158, %v853_v25 }
 0x807   :  { %v837_v27 = vpop.xlane.xlu0 %836 }
 0x808   :  { %v878_v28 = vadd.f32 1e-05, %v870_v26  ;;  %v859_v29 = vmul.f32 0.05263158, %v837_v27 }
 0x809   :  { %v911_v32 = vpop.permute.xlu1 %910 }
 0x80a   :  { %1098 = vrsqrt.f32 %v878_v28  ;;  %v867_v36 = vmul.f32 %v859_v29, %v859_v29  ;;  %v875_v52 = vsub.f32 %v1458_v49, %v859_v29 }
 0x80c   :  { %v871_v37 = vsub.f32 %v863_v34, %v867_v36 }
 0x80d   :  { %v919_v39 = vpop.permute.xlu1 %918 }
 0x80e   :  { %v879_v40 = vadd.f32 1e-05, %v871_v37 }
 0x810   :  { %v1097_v42 = vpop.eup %1096  ;;  %1100 = vrsqrt.f32 %v879_v40 }
 0x811   :  { %v885_v45 = vmul.f32 %v1097_v42, %v873_v41  ;;  %v923_v30 = vpop.permute.xlu1 %922 }
 0x813   :  { %v889_v46 = vmul.f32 %v1430_v12, %v885_v45 }
 0x814   :  { %v1099_v47 = vpop.eup %1098 }
 0x815   :  { %v893_v48 = vadd.f32 %v1437_v16, %v889_v46  ;;  %v886_v50 = vmul.f32 %v1099_v47, %v874_v31  ;;  %v931_v54 = vpop.permute.xlu1 %930 }
 0x817   :  { %vm897_vm6 = vcmp.ge.f32.partialorder %v893_v48, 0.0  ;;  %v901_v51 = vmul.f32 0.2, %v893_v48  ;;  %v890_v3 = vmul.f32 %v1430_v12, %v886_v50 }
 0x819   :  { %v905_v53 = vsel %vm897_vm6, %v893_v48, %v901_v51  ;;  %v935_v43 = vpop.permute.xlu1 %934  ;;  %v894_v7 = vadd.f32 %v1437_v16, %v890_v3 }
 0x81a   :  { %v1101_v57 = vpop.eup %1100  ;;  %v925_v35 = vmul.f32 %v911_v32, %v905_v53 }
 0x81b   :  { %v887_v33 = vmul.f32 %v1101_v57, %v875_v52  ;;  %v902_v6 = vmul.f32 0.2, %v894_v7  ;;  %vm898_vm8 = vcmp.ge.f32.partialorder %v894_v7, 0.0 }
 0x81c   :  { %v945_v58 = vadd.f32 %v931_v54, %v925_v35 }
 0x81d   :  { %v891_v59 = vmul.f32 %v1430_v12, %v887_v33  ;;  %v939_v62 = vpop.permute.xlu1 %938  ;;  %v906_v44 = vsel %vm898_vm8, %v894_v7, %v902_v6 }
 0x81e   :  { %v949_v55 = vsel %vm700_vm1, %v945_v58, 0.0 }
 0x81f   :  { %v895_v56 = vadd.f32 %v1437_v16, %v891_v59  ;;  %953 = vst [vmem:[#allocation2] sm:$0xff] %v949_v55 }
 0x821   :  { %vm899_vm7 = vcmp.ge.f32.partialorder %v895_v56, 0.0  ;;  %v903_v60 = vmul.f32 0.2, %v895_v56  ;;  %v943_v25 = vpop.permute.xlu1 %942 }
 0x823   :  { %v907_v61 = vsel %vm899_vm7, %v895_v56, %v903_v60 }
 0x824   :  { %v927_v63 = vmul.f32 %v919_v39, %v907_v61 }
 0x826   :  { %v947_v49 = vadd.f32 %v939_v62, %v927_v63 }
 0x828   :  { %v951_v0 = vsel %vm700_vm1, %v947_v49, 0.0 }
 0x829   :  { %955 = vst [vmem:[#allocation2 + $0x10] sm:$0xff] %v951_v0 }
 0x851   :  { %v840_v2 = vpop.xlane.xlu0 %839 }
 0x852   :  { %v860_v4 = vmul.f32 0.05263158, %v840_v2 }
 0x854   :  { %v868_v8 = vmul.f32 %v860_v4, %v860_v4  ;;  %v876_v18 = vsub.f32 %v1483_v11, %v860_v4 }
 0x855   :  { %v856_v5 = vpop.xlane.xlu0 %855 }
 0x856   :  { %v864_v10 = vmul.f32 0.05263158, %v856_v5 }
 0x858   :  { %v872_v38 = vsub.f32 %v864_v10, %v868_v8 }
 0x85a   :  { %v880_v13 = vadd.f32 1e-05, %v872_v38 }
 0x85c   :  { %1102 = vrsqrt.f32 %v880_v13 }
 0x85d   :  { %v915_v14 = vpop.permute.xlu0 %914 }
 0x85e   :  { %v926_v9 = vmul.f32 %v915_v14, %v906_v44 }
 0x860   :  { %v946_v15 = vadd.f32 %v935_v43, %v926_v9 }
 0x862   :  { %v950_v19 = vsel %vm700_vm1, %v946_v15, 0.0 }
 0x863   :  { %954 = vst [vmem:[#allocation2 + $0x8] sm:$0xff] %v950_v19 }
 0x866   :  { %v1103_v20 = vpop.eup %1102 }
 0x867   :  { %v888_v21 = vmul.f32 %v1103_v20, %v876_v18 }
 0x869   :  { %v892_v17 = vmul.f32 %v1430_v12, %v888_v21 }
 0x86b   :  { %v896_v23 = vadd.f32 %v1437_v16, %v892_v17 }
 0x86d   :  { %vm900_vm9 = vcmp.ge.f32.partialorder %v896_v23, 0.0  ;;  %v904_v22 = vmul.f32 0.2, %v896_v23 }
 0x86f   :  { %v908_v1 = vsel %vm900_vm9, %v896_v23, %v904_v22 }
 0x870   :  { %v928_v24 = vmul.f32 %v923_v30, %v908_v1 }
 0x872   :  { %v948_v26 = vadd.f32 %v943_v25, %v928_v24 }
 0x874   :  { %v952_v27 = vsel %vm700_vm1, %v948_v26, 0.0 }
 0x875   :  { %956 = vst [vmem:[#allocation2 + $0x18] sm:$0xff] %v952_v27 }
 0x876   :  { %1119 = shalt.err (!%p1116_p4)
}
 0x877   :  { %s1120_s12 = scalar_lea.hbm %s1523_s5, 512 }
 0x878   :  { %p1121_p5 = scmp.ne.s32.totalorder %s1523_s5, %s1120_s12  ;;  %p1124_p6 = scmp.lt.u32.totalorder %s1120_s12, %s1523_s5 }
 0x87a   :  { %p1126_p7 = pnand %p1124_p6, %p1121_p5 }
 0x87c   :  { %1129 = shalt.err (!%p1126_p7)
}
 0x87d   :  { %s1156_s16 = smov 128   ;;  %s1157_s17 = smov 8  }
 0x87e   :  { %968 = dma.vmem_to_hbm [thread:$0]  %s963_s8, 512, %s1523_s5, [#allocation3], %s1156_s16, %s1156_s16, %s1157_s17  }
 0x87f   :  { %1130 = dma.done.wait [#allocation3], 512  }
 0x880   :  { %1131 = vsyncadd [#allocation3], 4294966784 }
 0x881   :  { %972 = vsyncpa [#allocation3], 1 }

</bundles_post_ra>
